<compile_context>
chip_gen: v7x
topology: tpu7x:2x2x1
jax: 0.10.0
libtpu: 0.0.40
codegen_flags: <defaults>
</compile_context>

<pallas_src>
import math

import jax
import jax.numpy as jnp
from jax import lax
from jax.experimental import pallas as pl
from jax.experimental.pallas import tpu as pltpu

# ---------------- small BERT config (synthetic) ----------------
VOCAB = 64
DIM = 32
N_HEADS = 4
HEAD_DIM = DIM // N_HEADS
DIM_FF = 4 * DIM          # 128
N_LAYERS = 2
MAX_LEN = 16
N_SEGMENTS = 2
N_LABELS = 2
EPS = 1e-12               # TF-style LayerNorm: eps inside the sqrt
INV_SQRT2 = 1.0 / math.sqrt(2.0)
ATTN_SCALE = 1.0 / math.sqrt(HEAD_DIM)


def _tf_layernorm(x, gamma, beta):
  # x: (..., D); gamma/beta: (1, D).  rsqrt -> EUP slot.
  u = jnp.mean(x, axis=-1, keepdims=True)
  d = x - u
  s = jnp.mean(d * d, axis=-1, keepdims=True)
  return gamma * (d * lax.rsqrt(s + EPS)) + beta


# ---------------- single fused kernel: embeddings-LN -> N blocks -> pooler/cls ----
def fused_classifier_kernel(
    e_ref, mask_ref, eg_ref, eb_ref,
    wqkv_ref, bqkv_ref, wo_ref, bo_ref, g1_ref, be1_ref,
    w1_ref, bf1_ref, w2_ref, bf2_ref, g2_ref, be2_ref,
    wfc_ref, bfc_ref, wcls_ref, bcls_ref,
    logits_ref):
  B, S, D = e_ref.shape
  BS = B * S

  # additive key mask (1 = keep), broadcast over query rows and heads
  neg = 10000.0 * (1.0 - mask_ref[...])                    # (B, 1, S)

  # embedding LayerNorm; keep activations flattened (B*S, D) for all matmuls
  hf = _tf_layernorm(e_ref[...].reshape(BS, D), eg_ref[...], eb_ref[...])

  for l in range(N_LAYERS):                                # static unrolled loop
    # ---- fused QKV projection: one (BS, D) @ (D, 3D) matmul ----
    qkv = jnp.dot(hf, wqkv_ref[l], preferred_element_type=jnp.float32) + bqkv_ref[l]
    q = qkv[:, 0 * D:1 * D].reshape(B, S, D)
    k = qkv[:, 1 * D:2 * D].reshape(B, S, D)
    v = qkv[:, 2 * D:3 * D].reshape(B, S, D)

    # ---- multi-head attention, batched over B per head ----
    ctx = []
    for hd in range(N_HEADS):
      sl = slice(hd * HEAD_DIM, (hd + 1) * HEAD_DIM)
      qh, kh, vh = q[:, :, sl], k[:, :, sl], v[:, :, sl]   # (B, S, Dh)
      sc = jnp.einsum('bqd,bkd->bqk', qh, kh,
                      preferred_element_type=jnp.float32) * ATTN_SCALE
      sc = sc - neg                                        # mask padded keys
      sc = sc - jnp.max(sc, axis=-1, keepdims=True)
      ex = jnp.exp(sc)
      p = ex * pl.reciprocal(jnp.sum(ex, axis=-1, keepdims=True), approx=True)
      ctx_h = jnp.einsum('bqk,bkd->bqd', p, vh,
                         preferred_element_type=jnp.float32)
      ctx.append(ctx_h.reshape(BS, HEAD_DIM))
    att = jnp.concatenate(ctx, axis=-1)                    # (BS, D)

    # ---- output projection + residual + LayerNorm ----
    proj = jnp.dot(att, wo_ref[l], preferred_element_type=jnp.float32) + bo_ref[l]
    h1 = _tf_layernorm(hf + proj, g1_ref[l], be1_ref[l])

    # ---- position-wise FFN with exact erf-GELU + residual + LayerNorm ----
    f = jnp.dot(h1, w1_ref[l], preferred_element_type=jnp.float32) + bf1_ref[l]
    f = 0.5 * f * (1.0 + lax.erf(f * INV_SQRT2))
    f = jnp.dot(f, w2_ref[l], preferred_element_type=jnp.float32) + bf2_ref[l]

    hf = _tf_layernorm(h1 + f, g2_ref[l], be2_ref[l])

  # ---- CLS-token gather via one-hot selection matmul (MXU-friendly, no relayout) ----
  rows = lax.broadcasted_iota(jnp.int32, (B, BS), 0)
  cols = lax.broadcasted_iota(jnp.int32, (B, BS), 1)
  sel = (cols == rows * S).astype(jnp.float32)             # one-hot at column b*S
  cls = jnp.dot(sel, hf, preferred_element_type=jnp.float32)   # (B, D)

  # ---- pooler (fc + tanh) + classifier; dropout is identity in eval mode ----
  pooled = jnp.tanh(
      jnp.dot(cls, wfc_ref[...], preferred_element_type=jnp.float32) + bfc_ref[...])
  logits_ref[...] = (
      jnp.dot(pooled, wcls_ref[...], preferred_element_type=jnp.float32)
      + bcls_ref[...])


def fused_classifier_pallas(e, mask3, params):
  B = e.shape[0]
  vmem = pl.BlockSpec(memory_space=pltpu.MemorySpace.VMEM)
  args = (e, mask3, params["embed_g"], params["embed_b"],
          params["wqkv"], params["bqkv"], params["wo"], params["bo"],
          params["g1"], params["be1"],
          params["w1"], params["bf1"], params["w2"], params["bf2"],
          params["g2"], params["be2"],
          params["wfc"], params["bfc"], params["wcls"], params["bcls"])
  return pl.pallas_call(
      fused_classifier_kernel,
      out_shape=jax.ShapeDtypeStruct((B, N_LABELS), jnp.float32),
      in_specs=[vmem] * len(args),
      out_specs=vmem,
  )(*args)


# ---------------- parameters (deterministic, synthetic; layer weights stacked) ----
def init_params(key):
  def normal(k, shape, scale=0.02):
    return scale * jax.random.normal(k, shape, dtype=jnp.float32)

  keys = iter(jax.random.split(key, 5 + 6 * N_LAYERS))
  params = {
      "tok_embed": normal(next(keys), (VOCAB, DIM)),
      "pos_embed": normal(next(keys), (MAX_LEN, DIM)),
      "seg_embed": normal(next(keys), (N_SEGMENTS, DIM)),
      "embed_g": jnp.ones((1, DIM), jnp.float32),
      "embed_b": jnp.zeros((1, DIM), jnp.float32),
      # pooler fc + classifier (weights stored as [in, out])
      "wfc": normal(next(keys), (DIM, DIM)),
      "bfc": jnp.zeros((1, DIM), jnp.float32),
      "wcls": normal(next(keys), (DIM, N_LABELS)),
      "bcls": jnp.zeros((1, N_LABELS), jnp.float32),
  }
  wqkv, wo, w1, w2 = [], [], [], []
  for _ in range(N_LAYERS):
    wq = normal(next(keys), (DIM, DIM))
    wk = normal(next(keys), (DIM, DIM))
    wv = normal(next(keys), (DIM, DIM))
    wqkv.append(jnp.concatenate([wq, wk, wv], axis=-1))    # fused (D, 3D)
    wo.append(normal(next(keys), (DIM, DIM)))
    w1.append(normal(next(keys), (DIM, DIM_FF)))
    w2.append(normal(next(keys), (DIM_FF, DIM)))
  params.update({
      "wqkv": jnp.stack(wqkv),                             # (L, D, 3D)
      "bqkv": jnp.zeros((N_LAYERS, 1, 3 * DIM), jnp.float32),
      "wo": jnp.stack(wo),                                 # (L, D, D)
      "bo": jnp.zeros((N_LAYERS, 1, DIM), jnp.float32),
      "g1": jnp.ones((N_LAYERS, 1, DIM), jnp.float32),
      "be1": jnp.zeros((N_LAYERS, 1, DIM), jnp.float32),
      "w1": jnp.stack(w1),                                 # (L, D, DFF)
      "bf1": jnp.zeros((N_LAYERS, 1, DIM_FF), jnp.float32),
      "w2": jnp.stack(w2),                                 # (L, DFF, D)
      "bf2": jnp.zeros((N_LAYERS, 1, DIM), jnp.float32),
      "g2": jnp.ones((N_LAYERS, 1, DIM), jnp.float32),
      "be2": jnp.zeros((N_LAYERS, 1, DIM), jnp.float32),
  })
  return params


# ---------------- full forward (eval mode: all dropout = identity) ----------------
def classifier_forward(params, input_ids, segment_ids, input_mask):
  B, S = input_ids.shape
  # Embedding table gathers (data-dependent indexing) stay as plain-JAX glue.
  pos = jnp.arange(S)
  e = (params["tok_embed"][input_ids]
       + params["pos_embed"][pos][None, :, :]
       + params["seg_embed"][segment_ids])
  mask3 = input_mask.astype(jnp.float32).reshape(B, 1, S)
  # task is None -> no stsb sigmoid/clip branch
  return fused_classifier_pallas(e, mask3, params)


if __name__ == "__main__":
  key = jax.random.PRNGKey(0)
  k_par, k_ids, k_seg = jax.random.split(key, 3)

  B, S = 2, 8
  params = init_params(k_par)
  input_ids = jax.random.randint(k_ids, (B, S), 0, VOCAB, dtype=jnp.int32)
  segment_ids = jax.random.randint(k_seg, (B, S), 0, N_SEGMENTS, dtype=jnp.int32)
  # attention mask: last two positions of batch element 1 are padding
  input_mask = jnp.array(
      [[1, 1, 1, 1, 1, 1, 1, 1],
       [1, 1, 1, 1, 1, 1, 0, 0]], dtype=jnp.int32)

  run = jax.jit(classifier_forward)
  logits = run(params, input_ids, segment_ids, input_mask)
  jax.block_until_ready(logits)
  assert logits.shape == (B, N_LABELS)
  print("KERNEL_OK")
</pallas_src>

<mosaic_0001>
module attributes {stable_mosaic.version = 11 : i64} {
  func.func @fused_classifier_kernel(%arg0: memref<2x8x32xf32, #tpu.memory_space<vmem>>, %arg1: memref<2x1x8xf32, #tpu.memory_space<vmem>>, %arg2: memref<1x32xf32, #tpu.memory_space<vmem>>, %arg3: memref<1x32xf32, #tpu.memory_space<vmem>>, %arg4: memref<2x32x96xf32, #tpu.memory_space<vmem>>, %arg5: memref<2x1x96xf32, #tpu.memory_space<vmem>>, %arg6: memref<2x32x32xf32, #tpu.memory_space<vmem>>, %arg7: memref<2x1x32xf32, #tpu.memory_space<vmem>>, %arg8: memref<2x1x32xf32, #tpu.memory_space<vmem>>, %arg9: memref<2x1x32xf32, #tpu.memory_space<vmem>>, %arg10: memref<2x32x128xf32, #tpu.memory_space<vmem>>, %arg11: memref<2x1x128xf32, #tpu.memory_space<vmem>>, %arg12: memref<2x128x32xf32, #tpu.memory_space<vmem>>, %arg13: memref<2x1x32xf32, #tpu.memory_space<vmem>>, %arg14: memref<2x1x32xf32, #tpu.memory_space<vmem>>, %arg15: memref<2x1x32xf32, #tpu.memory_space<vmem>>, %arg16: memref<32x32xf32, #tpu.memory_space<vmem>>, %arg17: memref<1x32xf32, #tpu.memory_space<vmem>>, %arg18: memref<32x2xf32, #tpu.memory_space<vmem>>, %arg19: memref<1x2xf32, #tpu.memory_space<vmem>>, %arg20: memref<2x2xf32, #tpu.memory_space<vmem>>) attributes {dimension_semantics = [], scalar_prefetch = 0 : i64, scratch_operands = 0 : i64, tpu.core_type = #tpu.core_type<tc>} {
    %c0 = arith.constant 0 : index
    %c0_0 = arith.constant 0 : index
    %c0_1 = arith.constant 0 : index
    %0 = vector.load %arg1[%c0, %c0_0, %c0_1] : memref<2x1x8xf32, #tpu.memory_space<vmem>>, vector<2x1x8xf32>
    %cst = arith.constant 1.000000e+00 : f32
    %1 = vector.broadcast %cst : f32 to vector<2x1x8xf32>
    %2 = arith.subf %1, %0 : vector<2x1x8xf32>
    %cst_2 = arith.constant 1.000000e+04 : f32
    %3 = vector.broadcast %cst_2 : f32 to vector<2x1x8xf32>
    %4 = arith.mulf %3, %2 : vector<2x1x8xf32>
    %c0_3 = arith.constant 0 : index
    %c0_4 = arith.constant 0 : index
    %c0_5 = arith.constant 0 : index
    %5 = vector.load %arg0[%c0_3, %c0_4, %c0_5] : memref<2x8x32xf32, #tpu.memory_space<vmem>>, vector<2x8x32xf32>
    %6 = vector.shape_cast %5 : vector<2x8x32xf32> to vector<16x32xf32>
    %c0_6 = arith.constant 0 : index
    %c0_7 = arith.constant 0 : index
    %7 = vector.load %arg2[%c0_6, %c0_7] : memref<1x32xf32, #tpu.memory_space<vmem>>, vector<1x32xf32>
    %c0_8 = arith.constant 0 : index
    %c0_9 = arith.constant 0 : index
    %8 = vector.load %arg3[%c0_8, %c0_9] : memref<1x32xf32, #tpu.memory_space<vmem>>, vector<1x32xf32>
    %cst_10 = arith.constant dense<0.000000e+00> : vector<16xf32>
    %9 = vector.multi_reduction <add>, %6, %cst_10 [1] : vector<16x32xf32> to vector<16xf32>
    %10 = vector.shape_cast %9 : vector<16xf32> to vector<16x1xf32>
    %cst_11 = arith.constant 3.200000e+01 : f32
    %11 = vector.broadcast %cst_11 : f32 to vector<16x1xf32>
    %12 = arith.divf %10, %11 : vector<16x1xf32>
    %13 = vector.broadcast %12 : vector<16x1xf32> to vector<16x32xf32>
    %14 = arith.subf %6, %13 : vector<16x32xf32>
    %15 = arith.mulf %14, %14 : vector<16x32xf32>
    %cst_12 = arith.constant dense<0.000000e+00> : vector<16xf32>
    %16 = vector.multi_reduction <add>, %15, %cst_12 [1] : vector<16x32xf32> to vector<16xf32>
    %17 = vector.shape_cast %16 : vector<16xf32> to vector<16x1xf32>
    %cst_13 = arith.constant 3.200000e+01 : f32
    %18 = vector.broadcast %cst_13 : f32 to vector<16x1xf32>
    %19 = arith.divf %17, %18 : vector<16x1xf32>
    %cst_14 = arith.constant 9.99999996E-13 : f32
    %20 = vector.broadcast %cst_14 : f32 to vector<16x1xf32>
    %21 = arith.addf %19, %20 : vector<16x1xf32>
    %22 = math.rsqrt %21 : vector<16x1xf32>
    %23 = vector.broadcast %22 : vector<16x1xf32> to vector<16x32xf32>
    %24 = arith.mulf %14, %23 : vector<16x32xf32>
    %25 = vector.broadcast %7 : vector<1x32xf32> to vector<16x32xf32>
    %26 = arith.mulf %25, %24 : vector<16x32xf32>
    %27 = vector.broadcast %8 : vector<1x32xf32> to vector<16x32xf32>
    %28 = arith.addf %26, %27 : vector<16x32xf32>
    %c0_15 = arith.constant 0 : index
    %c0_16 = arith.constant 0 : index
    %c0_17 = arith.constant 0 : index
    %29 = vector.load %arg4[%c0_15, %c0_16, %c0_17] : memref<2x32x96xf32, #tpu.memory_space<vmem>>, vector<1x32x96xf32>
    %30 = vector.shape_cast %29 : vector<1x32x96xf32> to vector<32x96xf32>
    %cst_18 = arith.constant dense<0.000000e+00> : vector<16x96xf32>
    %31 = tpu.matmul %28, %30, %cst_18 {dimension_numbers = #tpu.dot_dimension_numbers<[1], [0], [0], [1], [0, 0, 1, 1], [], []>} : vector<16x32xf32>, vector<32x96xf32>, vector<16x96xf32> -> vector<16x96xf32>
    %c0_19 = arith.constant 0 : index
    %c0_20 = arith.constant 0 : index
    %c0_21 = arith.constant 0 : index
    %32 = vector.load %arg5[%c0_19, %c0_20, %c0_21] : memref<2x1x96xf32, #tpu.memory_space<vmem>>, vector<1x1x96xf32>
    %33 = vector.shape_cast %32 : vector<1x1x96xf32> to vector<1x96xf32>
    %34 = vector.broadcast %33 : vector<1x96xf32> to vector<16x96xf32>
    %35 = arith.addf %31, %34 : vector<16x96xf32>
    %36 = vector.extract_strided_slice %35 {offsets = [0, 0], sizes = [16, 32], strides = [1, 1]} : vector<16x96xf32> to vector<16x32xf32>
    %37 = vector.shape_cast %36 : vector<16x32xf32> to vector<2x8x32xf32>
    %38 = vector.extract_strided_slice %35 {offsets = [0, 32], sizes = [16, 32], strides = [1, 1]} : vector<16x96xf32> to vector<16x32xf32>
    %39 = vector.shape_cast %38 : vector<16x32xf32> to vector<2x8x32xf32>
    %40 = vector.extract_strided_slice %35 {offsets = [0, 64], sizes = [16, 32], strides = [1, 1]} : vector<16x96xf32> to vector<16x32xf32>
    %41 = vector.shape_cast %40 : vector<16x32xf32> to vector<2x8x32xf32>
    %42 = vector.extract_strided_slice %37 {offsets = [0, 0, 0], sizes = [2, 8, 8], strides = [1, 1, 1]} : vector<2x8x32xf32> to vector<2x8x8xf32>
    %43 = vector.extract_strided_slice %39 {offsets = [0, 0, 0], sizes = [2, 8, 8], strides = [1, 1, 1]} : vector<2x8x32xf32> to vector<2x8x8xf32>
    %44 = vector.extract_strided_slice %41 {offsets = [0, 0, 0], sizes = [2, 8, 8], strides = [1, 1, 1]} : vector<2x8x32xf32> to vector<2x8x8xf32>
    "tpu.trace_start"() <{level = 10 : i32, message = "bqd,bkd->bqk"}> : () -> ()
    %cst_22 = arith.constant dense<0.000000e+00> : vector<2x8x8xf32>
    %45 = tpu.matmul %42, %43, %cst_22 {dimension_numbers = #tpu.dot_dimension_numbers<[2], [2], [1], [1], [0, 0, 0, 1, 1, 1], [0], [0]>} : vector<2x8x8xf32>, vector<2x8x8xf32>, vector<2x8x8xf32> -> vector<2x8x8xf32>
    "tpu.trace_stop"() : () -> ()
    %cst_23 = arith.constant 0.353553385 : f32
    %46 = vector.broadcast %cst_23 : f32 to vector<2x8x8xf32>
    %47 = arith.mulf %45, %46 : vector<2x8x8xf32>
    %48 = vector.broadcast %4 : vector<2x1x8xf32> to vector<2x8x8xf32>
    %49 = arith.subf %47, %48 : vector<2x8x8xf32>
    %cst_24 = arith.constant dense<0xFF800000> : vector<2x8xf32>
    %50 = vector.multi_reduction <maximumf>, %49, %cst_24 [2] : vector<2x8x8xf32> to vector<2x8xf32>
    %51 = vector.shape_cast %50 : vector<2x8xf32> to vector<2x8x1xf32>
    %52 = vector.broadcast %51 : vector<2x8x1xf32> to vector<2x8x8xf32>
    %53 = arith.subf %49, %52 : vector<2x8x8xf32>
    %54 = math.exp %53 : vector<2x8x8xf32>
    %cst_25 = arith.constant dense<0.000000e+00> : vector<2x8xf32>
    %55 = vector.multi_reduction <add>, %54, %cst_25 [2] : vector<2x8x8xf32> to vector<2x8xf32>
    %56 = vector.shape_cast %55 : vector<2x8xf32> to vector<2x8x1xf32>
    %57 = tpu.reciprocal %56 {approx = true} : vector<2x8x1xf32> -> vector<2x8x1xf32>
    %58 = vector.broadcast %57 : vector<2x8x1xf32> to vector<2x8x8xf32>
    %59 = arith.mulf %54, %58 : vector<2x8x8xf32>
    "tpu.trace_start"() <{level = 10 : i32, message = "bqk,bkd->bqd"}> : () -> ()
    %cst_26 = arith.constant dense<0.000000e+00> : vector<2x8x8xf32>
    %60 = tpu.matmul %59, %44, %cst_26 {dimension_numbers = #tpu.dot_dimension_numbers<[2], [1], [1], [2], [0, 0, 0, 1, 1, 2], [0], [0]>} : vector<2x8x8xf32>, vector<2x8x8xf32>, vector<2x8x8xf32> -> vector<2x8x8xf32>
    "tpu.trace_stop"() : () -> ()
    %61 = vector.shape_cast %60 : vector<2x8x8xf32> to vector<16x8xf32>
    %62 = vector.extract_strided_slice %37 {offsets = [0, 0, 8], sizes = [2, 8, 8], strides = [1, 1, 1]} : vector<2x8x32xf32> to vector<2x8x8xf32>
    %63 = vector.extract_strided_slice %39 {offsets = [0, 0, 8], sizes = [2, 8, 8], strides = [1, 1, 1]} : vector<2x8x32xf32> to vector<2x8x8xf32>
    %64 = vector.extract_strided_slice %41 {offsets = [0, 0, 8], sizes = [2, 8, 8], strides = [1, 1, 1]} : vector<2x8x32xf32> to vector<2x8x8xf32>
    "tpu.trace_start"() <{level = 10 : i32, message = "bqd,bkd->bqk"}> : () -> ()
    %cst_27 = arith.constant dense<0.000000e+00> : vector<2x8x8xf32>
    %65 = tpu.matmul %62, %63, %cst_27 {dimension_numbers = #tpu.dot_dimension_numbers<[2], [2], [1], [1], [0, 0, 0, 1, 1, 1], [0], [0]>} : vector<2x8x8xf32>, vector<2x8x8xf32>, vector<2x8x8xf32> -> vector<2x8x8xf32>
    "tpu.trace_stop"() : () -> ()
    %cst_28 = arith.constant 0.353553385 : f32
    %66 = vector.broadcast %cst_28 : f32 to vector<2x8x8xf32>
    %67 = arith.mulf %65, %66 : vector<2x8x8xf32>
    %68 = vector.broadcast %4 : vector<2x1x8xf32> to vector<2x8x8xf32>
    %69 = arith.subf %67, %68 : vector<2x8x8xf32>
    %cst_29 = arith.constant dense<0xFF800000> : vector<2x8xf32>
    %70 = vector.multi_reduction <maximumf>, %69, %cst_29 [2] : vector<2x8x8xf32> to vector<2x8xf32>
    %71 = vector.shape_cast %70 : vector<2x8xf32> to vector<2x8x1xf32>
    %72 = vector.broadcast %71 : vector<2x8x1xf32> to vector<2x8x8xf32>
    %73 = arith.subf %69, %72 : vector<2x8x8xf32>
    %74 = math.exp %73 : vector<2x8x8xf32>
    %cst_30 = arith.constant dense<0.000000e+00> : vector<2x8xf32>
    %75 = vector.multi_reduction <add>, %74, %cst_30 [2] : vector<2x8x8xf32> to vector<2x8xf32>
    %76 = vector.shape_cast %75 : vector<2x8xf32> to vector<2x8x1xf32>
    %77 = tpu.reciprocal %76 {approx = true} : vector<2x8x1xf32> -> vector<2x8x1xf32>
    %78 = vector.broadcast %77 : vector<2x8x1xf32> to vector<2x8x8xf32>
    %79 = arith.mulf %74, %78 : vector<2x8x8xf32>
    "tpu.trace_start"() <{level = 10 : i32, message = "bqk,bkd->bqd"}> : () -> ()
    %cst_31 = arith.constant dense<0.000000e+00> : vector<2x8x8xf32>
    %80 = tpu.matmul %79, %64, %cst_31 {dimension_numbers = #tpu.dot_dimension_numbers<[2], [1], [1], [2], [0, 0, 0, 1, 1, 2], [0], [0]>} : vector<2x8x8xf32>, vector<2x8x8xf32>, vector<2x8x8xf32> -> vector<2x8x8xf32>
    "tpu.trace_stop"() : () -> ()
    %81 = vector.shape_cast %80 : vector<2x8x8xf32> to vector<16x8xf32>
    %82 = vector.extract_strided_slice %37 {offsets = [0, 0, 16], sizes = [2, 8, 8], strides = [1, 1, 1]} : vector<2x8x32xf32> to vector<2x8x8xf32>
    %83 = vector.extract_strided_slice %39 {offsets = [0, 0, 16], sizes = [2, 8, 8], strides = [1, 1, 1]} : vector<2x8x32xf32> to vector<2x8x8xf32>
    %84 = vector.extract_strided_slice %41 {offsets = [0, 0, 16], sizes = [2, 8, 8], strides = [1, 1, 1]} : vector<2x8x32xf32> to vector<2x8x8xf32>
    "tpu.trace_start"() <{level = 10 : i32, message = "bqd,bkd->bqk"}> : () -> ()
    %cst_32 = arith.constant dense<0.000000e+00> : vector<2x8x8xf32>
    %85 = tpu.matmul %82, %83, %cst_32 {dimension_numbers = #tpu.dot_dimension_numbers<[2], [2], [1], [1], [0, 0, 0, 1, 1, 1], [0], [0]>} : vector<2x8x8xf32>, vector<2x8x8xf32>, vector<2x8x8xf32> -> vector<2x8x8xf32>
    "tpu.trace_stop"() : () -> ()
    %cst_33 = arith.constant 0.353553385 : f32
    %86 = vector.broadcast %cst_33 : f32 to vector<2x8x8xf32>
    %87 = arith.mulf %85, %86 : vector<2x8x8xf32>
    %88 = vector.broadcast %4 : vector<2x1x8xf32> to vector<2x8x8xf32>
    %89 = arith.subf %87, %88 : vector<2x8x8xf32>
    %cst_34 = arith.constant dense<0xFF800000> : vector<2x8xf32>
    %90 = vector.multi_reduction <maximumf>, %89, %cst_34 [2] : vector<2x8x8xf32> to vector<2x8xf32>
    %91 = vector.shape_cast %90 : vector<2x8xf32> to vector<2x8x1xf32>
    %92 = vector.broadcast %91 : vector<2x8x1xf32> to vector<2x8x8xf32>
    %93 = arith.subf %89, %92 : vector<2x8x8xf32>
    %94 = math.exp %93 : vector<2x8x8xf32>
    %cst_35 = arith.constant dense<0.000000e+00> : vector<2x8xf32>
    %95 = vector.multi_reduction <add>, %94, %cst_35 [2] : vector<2x8x8xf32> to vector<2x8xf32>
    %96 = vector.shape_cast %95 : vector<2x8xf32> to vector<2x8x1xf32>
    %97 = tpu.reciprocal %96 {approx = true} : vector<2x8x1xf32> -> vector<2x8x1xf32>
    %98 = vector.broadcast %97 : vector<2x8x1xf32> to vector<2x8x8xf32>
    %99 = arith.mulf %94, %98 : vector<2x8x8xf32>
    "tpu.trace_start"() <{level = 10 : i32, message = "bqk,bkd->bqd"}> : () -> ()
    %cst_36 = arith.constant dense<0.000000e+00> : vector<2x8x8xf32>
    %100 = tpu.matmul %99, %84, %cst_36 {dimension_numbers = #tpu.dot_dimension_numbers<[2], [1], [1], [2], [0, 0, 0, 1, 1, 2], [0], [0]>} : vector<2x8x8xf32>, vector<2x8x8xf32>, vector<2x8x8xf32> -> vector<2x8x8xf32>
    "tpu.trace_stop"() : () -> ()
    %101 = vector.shape_cast %100 : vector<2x8x8xf32> to vector<16x8xf32>
    %102 = vector.extract_strided_slice %37 {offsets = [0, 0, 24], sizes = [2, 8, 8], strides = [1, 1, 1]} : vector<2x8x32xf32> to vector<2x8x8xf32>
    %103 = vector.extract_strided_slice %39 {offsets = [0, 0, 24], sizes = [2, 8, 8], strides = [1, 1, 1]} : vector<2x8x32xf32> to vector<2x8x8xf32>
    %104 = vector.extract_strided_slice %41 {offsets = [0, 0, 24], sizes = [2, 8, 8], strides = [1, 1, 1]} : vector<2x8x32xf32> to vector<2x8x8xf32>
    "tpu.trace_start"() <{level = 10 : i32, message = "bqd,bkd->bqk"}> : () -> ()
    %cst_37 = arith.constant dense<0.000000e+00> : vector<2x8x8xf32>
    %105 = tpu.matmul %102, %103, %cst_37 {dimension_numbers = #tpu.dot_dimension_numbers<[2], [2], [1], [1], [0, 0, 0, 1, 1, 1], [0], [0]>} : vector<2x8x8xf32>, vector<2x8x8xf32>, vector<2x8x8xf32> -> vector<2x8x8xf32>
    "tpu.trace_stop"() : () -> ()
    %cst_38 = arith.constant 0.353553385 : f32
    %106 = vector.broadcast %cst_38 : f32 to vector<2x8x8xf32>
    %107 = arith.mulf %105, %106 : vector<2x8x8xf32>
    %108 = vector.broadcast %4 : vector<2x1x8xf32> to vector<2x8x8xf32>
    %109 = arith.subf %107, %108 : vector<2x8x8xf32>
    %cst_39 = arith.constant dense<0xFF800000> : vector<2x8xf32>
    %110 = vector.multi_reduction <maximumf>, %109, %cst_39 [2] : vector<2x8x8xf32> to vector<2x8xf32>
    %111 = vector.shape_cast %110 : vector<2x8xf32> to vector<2x8x1xf32>
    %112 = vector.broadcast %111 : vector<2x8x1xf32> to vector<2x8x8xf32>
    %113 = arith.subf %109, %112 : vector<2x8x8xf32>
    %114 = math.exp %113 : vector<2x8x8xf32>
    %cst_40 = arith.constant dense<0.000000e+00> : vector<2x8xf32>
    %115 = vector.multi_reduction <add>, %114, %cst_40 [2] : vector<2x8x8xf32> to vector<2x8xf32>
    %116 = vector.shape_cast %115 : vector<2x8xf32> to vector<2x8x1xf32>
    %117 = tpu.reciprocal %116 {approx = true} : vector<2x8x1xf32> -> vector<2x8x1xf32>
    %118 = vector.broadcast %117 : vector<2x8x1xf32> to vector<2x8x8xf32>
    %119 = arith.mulf %114, %118 : vector<2x8x8xf32>
    "tpu.trace_start"() <{level = 10 : i32, message = "bqk,bkd->bqd"}> : () -> ()
    %cst_41 = arith.constant dense<0.000000e+00> : vector<2x8x8xf32>
    %120 = tpu.matmul %119, %104, %cst_41 {dimension_numbers = #tpu.dot_dimension_numbers<[2], [1], [1], [2], [0, 0, 0, 1, 1, 2], [0], [0]>} : vector<2x8x8xf32>, vector<2x8x8xf32>, vector<2x8x8xf32> -> vector<2x8x8xf32>
    "tpu.trace_stop"() : () -> ()
    %121 = vector.shape_cast %120 : vector<2x8x8xf32> to vector<16x8xf32>
    %122 = tpu.concatenate %61, %81, %101, %121 in 1 : vector<16x8xf32>, vector<16x8xf32>, vector<16x8xf32>, vector<16x8xf32> -> vector<16x32xf32>
    %c0_42 = arith.constant 0 : index
    %c0_43 = arith.constant 0 : index
    %c0_44 = arith.constant 0 : index
    %123 = vector.load %arg6[%c0_42, %c0_43, %c0_44] : memref<2x32x32xf32, #tpu.memory_space<vmem>>, vector<1x32x32xf32>
    %124 = vector.shape_cast %123 : vector<1x32x32xf32> to vector<32x32xf32>
    %cst_45 = arith.constant dense<0.000000e+00> : vector<16x32xf32>
    %125 = tpu.matmul %122, %124, %cst_45 {dimension_numbers = #tpu.dot_dimension_numbers<[1], [0], [0], [1], [0, 0, 1, 1], [], []>} : vector<16x32xf32>, vector<32x32xf32>, vector<16x32xf32> -> vector<16x32xf32>
    %c0_46 = arith.constant 0 : index
    %c0_47 = arith.constant 0 : index
    %c0_48 = arith.constant 0 : index
    %126 = vector.load %arg7[%c0_46, %c0_47, %c0_48] : memref<2x1x32xf32, #tpu.memory_space<vmem>>, vector<1x1x32xf32>
    %127 = vector.shape_cast %126 : vector<1x1x32xf32> to vector<1x32xf32>
    %128 = vector.broadcast %127 : vector<1x32xf32> to vector<16x32xf32>
    %129 = arith.addf %125, %128 : vector<16x32xf32>
    %130 = arith.addf %28, %129 : vector<16x32xf32>
    %c0_49 = arith.constant 0 : index
    %c0_50 = arith.constant 0 : index
    %c0_51 = arith.constant 0 : index
    %131 = vector.load %arg8[%c0_49, %c0_50, %c0_51] : memref<2x1x32xf32, #tpu.memory_space<vmem>>, vector<1x1x32xf32>
    %132 = vector.shape_cast %131 : vector<1x1x32xf32> to vector<1x32xf32>
    %c0_52 = arith.constant 0 : index
    %c0_53 = arith.constant 0 : index
    %c0_54 = arith.constant 0 : index
    %133 = vector.load %arg9[%c0_52, %c0_53, %c0_54] : memref<2x1x32xf32, #tpu.memory_space<vmem>>, vector<1x1x32xf32>
    %134 = vector.shape_cast %133 : vector<1x1x32xf32> to vector<1x32xf32>
    %cst_55 = arith.constant dense<0.000000e+00> : vector<16xf32>
    %135 = vector.multi_reduction <add>, %130, %cst_55 [1] : vector<16x32xf32> to vector<16xf32>
    %136 = vector.shape_cast %135 : vector<16xf32> to vector<16x1xf32>
    %cst_56 = arith.constant 3.200000e+01 : f32
    %137 = vector.broadcast %cst_56 : f32 to vector<16x1xf32>
    %138 = arith.divf %136, %137 : vector<16x1xf32>
    %139 = vector.broadcast %138 : vector<16x1xf32> to vector<16x32xf32>
    %140 = arith.subf %130, %139 : vector<16x32xf32>
    %141 = arith.mulf %140, %140 : vector<16x32xf32>
    %cst_57 = arith.constant dense<0.000000e+00> : vector<16xf32>
    %142 = vector.multi_reduction <add>, %141, %cst_57 [1] : vector<16x32xf32> to vector<16xf32>
    %143 = vector.shape_cast %142 : vector<16xf32> to vector<16x1xf32>
    %cst_58 = arith.constant 3.200000e+01 : f32
    %144 = vector.broadcast %cst_58 : f32 to vector<16x1xf32>
    %145 = arith.divf %143, %144 : vector<16x1xf32>
    %cst_59 = arith.constant 9.99999996E-13 : f32
    %146 = vector.broadcast %cst_59 : f32 to vector<16x1xf32>
    %147 = arith.addf %145, %146 : vector<16x1xf32>
    %148 = math.rsqrt %147 : vector<16x1xf32>
    %149 = vector.broadcast %148 : vector<16x1xf32> to vector<16x32xf32>
    %150 = arith.mulf %140, %149 : vector<16x32xf32>
    %151 = vector.broadcast %132 : vector<1x32xf32> to vector<16x32xf32>
    %152 = arith.mulf %151, %150 : vector<16x32xf32>
    %153 = vector.broadcast %134 : vector<1x32xf32> to vector<16x32xf32>
    %154 = arith.addf %152, %153 : vector<16x32xf32>
    %c0_60 = arith.constant 0 : index
    %c0_61 = arith.constant 0 : index
    %c0_62 = arith.constant 0 : index
    %155 = vector.load %arg10[%c0_60, %c0_61, %c0_62] : memref<2x32x128xf32, #tpu.memory_space<vmem>>, vector<1x32x128xf32>
    %156 = vector.shape_cast %155 : vector<1x32x128xf32> to vector<32x128xf32>
    %cst_63 = arith.constant dense<0.000000e+00> : vector<16x128xf32>
    %157 = tpu.matmul %154, %156, %cst_63 {dimension_numbers = #tpu.dot_dimension_numbers<[1], [0], [0], [1], [0, 0, 1, 1], [], []>} : vector<16x32xf32>, vector<32x128xf32>, vector<16x128xf32> -> vector<16x128xf32>
    %c0_64 = arith.constant 0 : index
    %c0_65 = arith.constant 0 : index
    %c0_66 = arith.constant 0 : index
    %158 = vector.load %arg11[%c0_64, %c0_65, %c0_66] : memref<2x1x128xf32, #tpu.memory_space<vmem>>, vector<1x1x128xf32>
    %159 = vector.shape_cast %158 : vector<1x1x128xf32> to vector<1x128xf32>
    %160 = vector.broadcast %159 : vector<1x128xf32> to vector<16x128xf32>
    %161 = arith.addf %157, %160 : vector<16x128xf32>
    %cst_67 = arith.constant 5.000000e-01 : f32
    %162 = vector.broadcast %cst_67 : f32 to vector<16x128xf32>
    %163 = arith.mulf %162, %161 : vector<16x128xf32>
    %cst_68 = arith.constant 0.707106769 : f32
    %164 = vector.broadcast %cst_68 : f32 to vector<16x128xf32>
    %165 = arith.mulf %161, %164 : vector<16x128xf32>
    %166 = math.erf %165 : vector<16x128xf32>
    %cst_69 = arith.constant 1.000000e+00 : f32
    %167 = vector.broadcast %cst_69 : f32 to vector<16x128xf32>
    %168 = arith.addf %167, %166 : vector<16x128xf32>
    %169 = arith.mulf %163, %168 : vector<16x128xf32>
    %c0_70 = arith.constant 0 : index
    %c0_71 = arith.constant 0 : index
    %c0_72 = arith.constant 0 : index
    %170 = vector.load %arg12[%c0_70, %c0_71, %c0_72] : memref<2x128x32xf32, #tpu.memory_space<vmem>>, vector<1x128x32xf32>
    %171 = vector.shape_cast %170 : vector<1x128x32xf32> to vector<128x32xf32>
    %cst_73 = arith.constant dense<0.000000e+00> : vector<16x32xf32>
    %172 = tpu.matmul %169, %171, %cst_73 {dimension_numbers = #tpu.dot_dimension_numbers<[1], [0], [0], [1], [0, 0, 1, 1], [], []>} : vector<16x128xf32>, vector<128x32xf32>, vector<16x32xf32> -> vector<16x32xf32>
    %c0_74 = arith.constant 0 : index
    %c0_75 = arith.constant 0 : index
    %c0_76 = arith.constant 0 : index
    %173 = vector.load %arg13[%c0_74, %c0_75, %c0_76] : memref<2x1x32xf32, #tpu.memory_space<vmem>>, vector<1x1x32xf32>
    %174 = vector.shape_cast %173 : vector<1x1x32xf32> to vector<1x32xf32>
    %175 = vector.broadcast %174 : vector<1x32xf32> to vector<16x32xf32>
    %176 = arith.addf %172, %175 : vector<16x32xf32>
    %177 = arith.addf %154, %176 : vector<16x32xf32>
    %c0_77 = arith.constant 0 : index
    %c0_78 = arith.constant 0 : index
    %c0_79 = arith.constant 0 : index
    %178 = vector.load %arg14[%c0_77, %c0_78, %c0_79] : memref<2x1x32xf32, #tpu.memory_space<vmem>>, vector<1x1x32xf32>
    %179 = vector.shape_cast %178 : vector<1x1x32xf32> to vector<1x32xf32>
    %c0_80 = arith.constant 0 : index
    %c0_81 = arith.constant 0 : index
    %c0_82 = arith.constant 0 : index
    %180 = vector.load %arg15[%c0_80, %c0_81, %c0_82] : memref<2x1x32xf32, #tpu.memory_space<vmem>>, vector<1x1x32xf32>
    %181 = vector.shape_cast %180 : vector<1x1x32xf32> to vector<1x32xf32>
    %cst_83 = arith.constant dense<0.000000e+00> : vector<16xf32>
    %182 = vector.multi_reduction <add>, %177, %cst_83 [1] : vector<16x32xf32> to vector<16xf32>
    %183 = vector.shape_cast %182 : vector<16xf32> to vector<16x1xf32>
    %cst_84 = arith.constant 3.200000e+01 : f32
    %184 = vector.broadcast %cst_84 : f32 to vector<16x1xf32>
    %185 = arith.divf %183, %184 : vector<16x1xf32>
    %186 = vector.broadcast %185 : vector<16x1xf32> to vector<16x32xf32>
    %187 = arith.subf %177, %186 : vector<16x32xf32>
    %188 = arith.mulf %187, %187 : vector<16x32xf32>
    %cst_85 = arith.constant dense<0.000000e+00> : vector<16xf32>
    %189 = vector.multi_reduction <add>, %188, %cst_85 [1] : vector<16x32xf32> to vector<16xf32>
    %190 = vector.shape_cast %189 : vector<16xf32> to vector<16x1xf32>
    %cst_86 = arith.constant 3.200000e+01 : f32
    %191 = vector.broadcast %cst_86 : f32 to vector<16x1xf32>
    %192 = arith.divf %190, %191 : vector<16x1xf32>
    %cst_87 = arith.constant 9.99999996E-13 : f32
    %193 = vector.broadcast %cst_87 : f32 to vector<16x1xf32>
    %194 = arith.addf %192, %193 : vector<16x1xf32>
    %195 = math.rsqrt %194 : vector<16x1xf32>
    %196 = vector.broadcast %195 : vector<16x1xf32> to vector<16x32xf32>
    %197 = arith.mulf %187, %196 : vector<16x32xf32>
    %198 = vector.broadcast %179 : vector<1x32xf32> to vector<16x32xf32>
    %199 = arith.mulf %198, %197 : vector<16x32xf32>
    %200 = vector.broadcast %181 : vector<1x32xf32> to vector<16x32xf32>
    %201 = arith.addf %199, %200 : vector<16x32xf32>
    %c1 = arith.constant 1 : index
    %c0_88 = arith.constant 0 : index
    %c0_89 = arith.constant 0 : index
    %202 = vector.load %arg4[%c1, %c0_88, %c0_89] : memref<2x32x96xf32, #tpu.memory_space<vmem>>, vector<1x32x96xf32>
    %203 = vector.shape_cast %202 : vector<1x32x96xf32> to vector<32x96xf32>
    %cst_90 = arith.constant dense<0.000000e+00> : vector<16x96xf32>
    %204 = tpu.matmul %201, %203, %cst_90 {dimension_numbers = #tpu.dot_dimension_numbers<[1], [0], [0], [1], [0, 0, 1, 1], [], []>} : vector<16x32xf32>, vector<32x96xf32>, vector<16x96xf32> -> vector<16x96xf32>
    %c1_91 = arith.constant 1 : index
    %c0_92 = arith.constant 0 : index
    %c0_93 = arith.constant 0 : index
    %205 = vector.load %arg5[%c1_91, %c0_92, %c0_93] : memref<2x1x96xf32, #tpu.memory_space<vmem>>, vector<1x1x96xf32>
    %206 = vector.shape_cast %205 : vector<1x1x96xf32> to vector<1x96xf32>
    %207 = vector.broadcast %206 : vector<1x96xf32> to vector<16x96xf32>
    %208 = arith.addf %204, %207 : vector<16x96xf32>
    %209 = vector.extract_strided_slice %208 {offsets = [0, 0], sizes = [16, 32], strides = [1, 1]} : vector<16x96xf32> to vector<16x32xf32>
    %210 = vector.shape_cast %209 : vector<16x32xf32> to vector<2x8x32xf32>
    %211 = vector.extract_strided_slice %208 {offsets = [0, 32], sizes = [16, 32], strides = [1, 1]} : vector<16x96xf32> to vector<16x32xf32>
    %212 = vector.shape_cast %211 : vector<16x32xf32> to vector<2x8x32xf32>
    %213 = vector.extract_strided_slice %208 {offsets = [0, 64], sizes = [16, 32], strides = [1, 1]} : vector<16x96xf32> to vector<16x32xf32>
    %214 = vector.shape_cast %213 : vector<16x32xf32> to vector<2x8x32xf32>
    %215 = vector.extract_strided_slice %210 {offsets = [0, 0, 0], sizes = [2, 8, 8], strides = [1, 1, 1]} : vector<2x8x32xf32> to vector<2x8x8xf32>
    %216 = vector.extract_strided_slice %212 {offsets = [0, 0, 0], sizes = [2, 8, 8], strides = [1, 1, 1]} : vector<2x8x32xf32> to vector<2x8x8xf32>
    %217 = vector.extract_strided_slice %214 {offsets = [0, 0, 0], sizes = [2, 8, 8], strides = [1, 1, 1]} : vector<2x8x32xf32> to vector<2x8x8xf32>
    "tpu.trace_start"() <{level = 10 : i32, message = "bqd,bkd->bqk"}> : () -> ()
    %cst_94 = arith.constant dense<0.000000e+00> : vector<2x8x8xf32>
    %218 = tpu.matmul %215, %216, %cst_94 {dimension_numbers = #tpu.dot_dimension_numbers<[2], [2], [1], [1], [0, 0, 0, 1, 1, 1], [0], [0]>} : vector<2x8x8xf32>, vector<2x8x8xf32>, vector<2x8x8xf32> -> vector<2x8x8xf32>
    "tpu.trace_stop"() : () -> ()
    %cst_95 = arith.constant 0.353553385 : f32
    %219 = vector.broadcast %cst_95 : f32 to vector<2x8x8xf32>
    %220 = arith.mulf %218, %219 : vector<2x8x8xf32>
    %221 = vector.broadcast %4 : vector<2x1x8xf32> to vector<2x8x8xf32>
    %222 = arith.subf %220, %221 : vector<2x8x8xf32>
    %cst_96 = arith.constant dense<0xFF800000> : vector<2x8xf32>
    %223 = vector.multi_reduction <maximumf>, %222, %cst_96 [2] : vector<2x8x8xf32> to vector<2x8xf32>
    %224 = vector.shape_cast %223 : vector<2x8xf32> to vector<2x8x1xf32>
    %225 = vector.broadcast %224 : vector<2x8x1xf32> to vector<2x8x8xf32>
    %226 = arith.subf %222, %225 : vector<2x8x8xf32>
    %227 = math.exp %226 : vector<2x8x8xf32>
    %cst_97 = arith.constant dense<0.000000e+00> : vector<2x8xf32>
    %228 = vector.multi_reduction <add>, %227, %cst_97 [2] : vector<2x8x8xf32> to vector<2x8xf32>
    %229 = vector.shape_cast %228 : vector<2x8xf32> to vector<2x8x1xf32>
    %230 = tpu.reciprocal %229 {approx = true} : vector<2x8x1xf32> -> vector<2x8x1xf32>
    %231 = vector.broadcast %230 : vector<2x8x1xf32> to vector<2x8x8xf32>
    %232 = arith.mulf %227, %231 : vector<2x8x8xf32>
    "tpu.trace_start"() <{level = 10 : i32, message = "bqk,bkd->bqd"}> : () -> ()
    %cst_98 = arith.constant dense<0.000000e+00> : vector<2x8x8xf32>
    %233 = tpu.matmul %232, %217, %cst_98 {dimension_numbers = #tpu.dot_dimension_numbers<[2], [1], [1], [2], [0, 0, 0, 1, 1, 2], [0], [0]>} : vector<2x8x8xf32>, vector<2x8x8xf32>, vector<2x8x8xf32> -> vector<2x8x8xf32>
    "tpu.trace_stop"() : () -> ()
    %234 = vector.shape_cast %233 : vector<2x8x8xf32> to vector<16x8xf32>
    %235 = vector.extract_strided_slice %210 {offsets = [0, 0, 8], sizes = [2, 8, 8], strides = [1, 1, 1]} : vector<2x8x32xf32> to vector<2x8x8xf32>
    %236 = vector.extract_strided_slice %212 {offsets = [0, 0, 8], sizes = [2, 8, 8], strides = [1, 1, 1]} : vector<2x8x32xf32> to vector<2x8x8xf32>
    %237 = vector.extract_strided_slice %214 {offsets = [0, 0, 8], sizes = [2, 8, 8], strides = [1, 1, 1]} : vector<2x8x32xf32> to vector<2x8x8xf32>
    "tpu.trace_start"() <{level = 10 : i32, message = "bqd,bkd->bqk"}> : () -> ()
    %cst_99 = arith.constant dense<0.000000e+00> : vector<2x8x8xf32>
    %238 = tpu.matmul %235, %236, %cst_99 {dimension_numbers = #tpu.dot_dimension_numbers<[2], [2], [1], [1], [0, 0, 0, 1, 1, 1], [0], [0]>} : vector<2x8x8xf32>, vector<2x8x8xf32>, vector<2x8x8xf32> -> vector<2x8x8xf32>
    "tpu.trace_stop"() : () -> ()
    %cst_100 = arith.constant 0.353553385 : f32
    %239 = vector.broadcast %cst_100 : f32 to vector<2x8x8xf32>
    %240 = arith.mulf %238, %239 : vector<2x8x8xf32>
    %241 = vector.broadcast %4 : vector<2x1x8xf32> to vector<2x8x8xf32>
    %242 = arith.subf %240, %241 : vector<2x8x8xf32>
    %cst_101 = arith.constant dense<0xFF800000> : vector<2x8xf32>
    %243 = vector.multi_reduction <maximumf>, %242, %cst_101 [2] : vector<2x8x8xf32> to vector<2x8xf32>
    %244 = vector.shape_cast %243 : vector<2x8xf32> to vector<2x8x1xf32>
    %245 = vector.broadcast %244 : vector<2x8x1xf32> to vector<2x8x8xf32>
    %246 = arith.subf %242, %245 : vector<2x8x8xf32>
    %247 = math.exp %246 : vector<2x8x8xf32>
    %cst_102 = arith.constant dense<0.000000e+00> : vector<2x8xf32>
    %248 = vector.multi_reduction <add>, %247, %cst_102 [2] : vector<2x8x8xf32> to vector<2x8xf32>
    %249 = vector.shape_cast %248 : vector<2x8xf32> to vector<2x8x1xf32>
    %250 = tpu.reciprocal %249 {approx = true} : vector<2x8x1xf32> -> vector<2x8x1xf32>
    %251 = vector.broadcast %250 : vector<2x8x1xf32> to vector<2x8x8xf32>
    %252 = arith.mulf %247, %251 : vector<2x8x8xf32>
    "tpu.trace_start"() <{level = 10 : i32, message = "bqk,bkd->bqd"}> : () -> ()
    %cst_103 = arith.constant dense<0.000000e+00> : vector<2x8x8xf32>
    %253 = tpu.matmul %252, %237, %cst_103 {dimension_numbers = #tpu.dot_dimension_numbers<[2], [1], [1], [2], [0, 0, 0, 1, 1, 2], [0], [0]>} : vector<2x8x8xf32>, vector<2x8x8xf32>, vector<2x8x8xf32> -> vector<2x8x8xf32>
    "tpu.trace_stop"() : () -> ()
    %254 = vector.shape_cast %253 : vector<2x8x8xf32> to vector<16x8xf32>
    %255 = vector.extract_strided_slice %210 {offsets = [0, 0, 16], sizes = [2, 8, 8], strides = [1, 1, 1]} : vector<2x8x32xf32> to vector<2x8x8xf32>
    %256 = vector.extract_strided_slice %212 {offsets = [0, 0, 16], sizes = [2, 8, 8], strides = [1, 1, 1]} : vector<2x8x32xf32> to vector<2x8x8xf32>
    %257 = vector.extract_strided_slice %214 {offsets = [0, 0, 16], sizes = [2, 8, 8], strides = [1, 1, 1]} : vector<2x8x32xf32> to vector<2x8x8xf32>
    "tpu.trace_start"() <{level = 10 : i32, message = "bqd,bkd->bqk"}> : () -> ()
    %cst_104 = arith.constant dense<0.000000e+00> : vector<2x8x8xf32>
    %258 = tpu.matmul %255, %256, %cst_104 {dimension_numbers = #tpu.dot_dimension_numbers<[2], [2], [1], [1], [0, 0, 0, 1, 1, 1], [0], [0]>} : vector<2x8x8xf32>, vector<2x8x8xf32>, vector<2x8x8xf32> -> vector<2x8x8xf32>
    "tpu.trace_stop"() : () -> ()
    %cst_105 = arith.constant 0.353553385 : f32
    %259 = vector.broadcast %cst_105 : f32 to vector<2x8x8xf32>
    %260 = arith.mulf %258, %259 : vector<2x8x8xf32>
    %261 = vector.broadcast %4 : vector<2x1x8xf32> to vector<2x8x8xf32>
    %262 = arith.subf %260, %261 : vector<2x8x8xf32>
    %cst_106 = arith.constant dense<0xFF800000> : vector<2x8xf32>
    %263 = vector.multi_reduction <maximumf>, %262, %cst_106 [2] : vector<2x8x8xf32> to vector<2x8xf32>
    %264 = vector.shape_cast %263 : vector<2x8xf32> to vector<2x8x1xf32>
    %265 = vector.broadcast %264 : vector<2x8x1xf32> to vector<2x8x8xf32>
    %266 = arith.subf %262, %265 : vector<2x8x8xf32>
    %267 = math.exp %266 : vector<2x8x8xf32>
    %cst_107 = arith.constant dense<0.000000e+00> : vector<2x8xf32>
    %268 = vector.multi_reduction <add>, %267, %cst_107 [2] : vector<2x8x8xf32> to vector<2x8xf32>
    %269 = vector.shape_cast %268 : vector<2x8xf32> to vector<2x8x1xf32>
    %270 = tpu.reciprocal %269 {approx = true} : vector<2x8x1xf32> -> vector<2x8x1xf32>
    %271 = vector.broadcast %270 : vector<2x8x1xf32> to vector<2x8x8xf32>
    %272 = arith.mulf %267, %271 : vector<2x8x8xf32>
    "tpu.trace_start"() <{level = 10 : i32, message = "bqk,bkd->bqd"}> : () -> ()
    %cst_108 = arith.constant dense<0.000000e+00> : vector<2x8x8xf32>
    %273 = tpu.matmul %272, %257, %cst_108 {dimension_numbers = #tpu.dot_dimension_numbers<[2], [1], [1], [2], [0, 0, 0, 1, 1, 2], [0], [0]>} : vector<2x8x8xf32>, vector<2x8x8xf32>, vector<2x8x8xf32> -> vector<2x8x8xf32>
    "tpu.trace_stop"() : () -> ()
    %274 = vector.shape_cast %273 : vector<2x8x8xf32> to vector<16x8xf32>
    %275 = vector.extract_strided_slice %210 {offsets = [0, 0, 24], sizes = [2, 8, 8], strides = [1, 1, 1]} : vector<2x8x32xf32> to vector<2x8x8xf32>
    %276 = vector.extract_strided_slice %212 {offsets = [0, 0, 24], sizes = [2, 8, 8], strides = [1, 1, 1]} : vector<2x8x32xf32> to vector<2x8x8xf32>
    %277 = vector.extract_strided_slice %214 {offsets = [0, 0, 24], sizes = [2, 8, 8], strides = [1, 1, 1]} : vector<2x8x32xf32> to vector<2x8x8xf32>
    "tpu.trace_start"() <{level = 10 : i32, message = "bqd,bkd->bqk"}> : () -> ()
    %cst_109 = arith.constant dense<0.000000e+00> : vector<2x8x8xf32>
    %278 = tpu.matmul %275, %276, %cst_109 {dimension_numbers = #tpu.dot_dimension_numbers<[2], [2], [1], [1], [0, 0, 0, 1, 1, 1], [0], [0]>} : vector<2x8x8xf32>, vector<2x8x8xf32>, vector<2x8x8xf32> -> vector<2x8x8xf32>
    "tpu.trace_stop"() : () -> ()
    %cst_110 = arith.constant 0.353553385 : f32
    %279 = vector.broadcast %cst_110 : f32 to vector<2x8x8xf32>
    %280 = arith.mulf %278, %279 : vector<2x8x8xf32>
    %281 = vector.broadcast %4 : vector<2x1x8xf32> to vector<2x8x8xf32>
    %282 = arith.subf %280, %281 : vector<2x8x8xf32>
    %cst_111 = arith.constant dense<0xFF800000> : vector<2x8xf32>
    %283 = vector.multi_reduction <maximumf>, %282, %cst_111 [2] : vector<2x8x8xf32> to vector<2x8xf32>
    %284 = vector.shape_cast %283 : vector<2x8xf32> to vector<2x8x1xf32>
    %285 = vector.broadcast %284 : vector<2x8x1xf32> to vector<2x8x8xf32>
    %286 = arith.subf %282, %285 : vector<2x8x8xf32>
    %287 = math.exp %286 : vector<2x8x8xf32>
    %cst_112 = arith.constant dense<0.000000e+00> : vector<2x8xf32>
    %288 = vector.multi_reduction <add>, %287, %cst_112 [2] : vector<2x8x8xf32> to vector<2x8xf32>
    %289 = vector.shape_cast %288 : vector<2x8xf32> to vector<2x8x1xf32>
    %290 = tpu.reciprocal %289 {approx = true} : vector<2x8x1xf32> -> vector<2x8x1xf32>
    %291 = vector.broadcast %290 : vector<2x8x1xf32> to vector<2x8x8xf32>
    %292 = arith.mulf %287, %291 : vector<2x8x8xf32>
    "tpu.trace_start"() <{level = 10 : i32, message = "bqk,bkd->bqd"}> : () -> ()
    %cst_113 = arith.constant dense<0.000000e+00> : vector<2x8x8xf32>
    %293 = tpu.matmul %292, %277, %cst_113 {dimension_numbers = #tpu.dot_dimension_numbers<[2], [1], [1], [2], [0, 0, 0, 1, 1, 2], [0], [0]>} : vector<2x8x8xf32>, vector<2x8x8xf32>, vector<2x8x8xf32> -> vector<2x8x8xf32>
    "tpu.trace_stop"() : () -> ()
    %294 = vector.shape_cast %293 : vector<2x8x8xf32> to vector<16x8xf32>
    %295 = tpu.concatenate %234, %254, %274, %294 in 1 : vector<16x8xf32>, vector<16x8xf32>, vector<16x8xf32>, vector<16x8xf32> -> vector<16x32xf32>
    %c1_114 = arith.constant 1 : index
    %c0_115 = arith.constant 0 : index
    %c0_116 = arith.constant 0 : index
    %296 = vector.load %arg6[%c1_114, %c0_115, %c0_116] : memref<2x32x32xf32, #tpu.memory_space<vmem>>, vector<1x32x32xf32>
    %297 = vector.shape_cast %296 : vector<1x32x32xf32> to vector<32x32xf32>
    %cst_117 = arith.constant dense<0.000000e+00> : vector<16x32xf32>
    %298 = tpu.matmul %295, %297, %cst_117 {dimension_numbers = #tpu.dot_dimension_numbers<[1], [0], [0], [1], [0, 0, 1, 1], [], []>} : vector<16x32xf32>, vector<32x32xf32>, vector<16x32xf32> -> vector<16x32xf32>
    %c1_118 = arith.constant 1 : index
    %c0_119 = arith.constant 0 : index
    %c0_120 = arith.constant 0 : index
    %299 = vector.load %arg7[%c1_118, %c0_119, %c0_120] : memref<2x1x32xf32, #tpu.memory_space<vmem>>, vector<1x1x32xf32>
    %300 = vector.shape_cast %299 : vector<1x1x32xf32> to vector<1x32xf32>
    %301 = vector.broadcast %300 : vector<1x32xf32> to vector<16x32xf32>
    %302 = arith.addf %298, %301 : vector<16x32xf32>
    %303 = arith.addf %201, %302 : vector<16x32xf32>
    %c1_121 = arith.constant 1 : index
    %c0_122 = arith.constant 0 : index
    %c0_123 = arith.constant 0 : index
    %304 = vector.load %arg8[%c1_121, %c0_122, %c0_123] : memref<2x1x32xf32, #tpu.memory_space<vmem>>, vector<1x1x32xf32>
    %305 = vector.shape_cast %304 : vector<1x1x32xf32> to vector<1x32xf32>
    %c1_124 = arith.constant 1 : index
    %c0_125 = arith.constant 0 : index
    %c0_126 = arith.constant 0 : index
    %306 = vector.load %arg9[%c1_124, %c0_125, %c0_126] : memref<2x1x32xf32, #tpu.memory_space<vmem>>, vector<1x1x32xf32>
    %307 = vector.shape_cast %306 : vector<1x1x32xf32> to vector<1x32xf32>
    %cst_127 = arith.constant dense<0.000000e+00> : vector<16xf32>
    %308 = vector.multi_reduction <add>, %303, %cst_127 [1] : vector<16x32xf32> to vector<16xf32>
    %309 = vector.shape_cast %308 : vector<16xf32> to vector<16x1xf32>
    %cst_128 = arith.constant 3.200000e+01 : f32
    %310 = vector.broadcast %cst_128 : f32 to vector<16x1xf32>
    %311 = arith.divf %309, %310 : vector<16x1xf32>
    %312 = vector.broadcast %311 : vector<16x1xf32> to vector<16x32xf32>
    %313 = arith.subf %303, %312 : vector<16x32xf32>
    %314 = arith.mulf %313, %313 : vector<16x32xf32>
    %cst_129 = arith.constant dense<0.000000e+00> : vector<16xf32>
    %315 = vector.multi_reduction <add>, %314, %cst_129 [1] : vector<16x32xf32> to vector<16xf32>
    %316 = vector.shape_cast %315 : vector<16xf32> to vector<16x1xf32>
    %cst_130 = arith.constant 3.200000e+01 : f32
    %317 = vector.broadcast %cst_130 : f32 to vector<16x1xf32>
    %318 = arith.divf %316, %317 : vector<16x1xf32>
    %cst_131 = arith.constant 9.99999996E-13 : f32
    %319 = vector.broadcast %cst_131 : f32 to vector<16x1xf32>
    %320 = arith.addf %318, %319 : vector<16x1xf32>
    %321 = math.rsqrt %320 : vector<16x1xf32>
    %322 = vector.broadcast %321 : vector<16x1xf32> to vector<16x32xf32>
    %323 = arith.mulf %313, %322 : vector<16x32xf32>
    %324 = vector.broadcast %305 : vector<1x32xf32> to vector<16x32xf32>
    %325 = arith.mulf %324, %323 : vector<16x32xf32>
    %326 = vector.broadcast %307 : vector<1x32xf32> to vector<16x32xf32>
    %327 = arith.addf %325, %326 : vector<16x32xf32>
    %c1_132 = arith.constant 1 : index
    %c0_133 = arith.constant 0 : index
    %c0_134 = arith.constant 0 : index
    %328 = vector.load %arg10[%c1_132, %c0_133, %c0_134] : memref<2x32x128xf32, #tpu.memory_space<vmem>>, vector<1x32x128xf32>
    %329 = vector.shape_cast %328 : vector<1x32x128xf32> to vector<32x128xf32>
    %cst_135 = arith.constant dense<0.000000e+00> : vector<16x128xf32>
    %330 = tpu.matmul %327, %329, %cst_135 {dimension_numbers = #tpu.dot_dimension_numbers<[1], [0], [0], [1], [0, 0, 1, 1], [], []>} : vector<16x32xf32>, vector<32x128xf32>, vector<16x128xf32> -> vector<16x128xf32>
    %c1_136 = arith.constant 1 : index
    %c0_137 = arith.constant 0 : index
    %c0_138 = arith.constant 0 : index
    %331 = vector.load %arg11[%c1_136, %c0_137, %c0_138] : memref<2x1x128xf32, #tpu.memory_space<vmem>>, vector<1x1x128xf32>
    %332 = vector.shape_cast %331 : vector<1x1x128xf32> to vector<1x128xf32>
    %333 = vector.broadcast %332 : vector<1x128xf32> to vector<16x128xf32>
    %334 = arith.addf %330, %333 : vector<16x128xf32>
    %cst_139 = arith.constant 5.000000e-01 : f32
    %335 = vector.broadcast %cst_139 : f32 to vector<16x128xf32>
    %336 = arith.mulf %335, %334 : vector<16x128xf32>
    %cst_140 = arith.constant 0.707106769 : f32
    %337 = vector.broadcast %cst_140 : f32 to vector<16x128xf32>
    %338 = arith.mulf %334, %337 : vector<16x128xf32>
    %339 = math.erf %338 : vector<16x128xf32>
    %cst_141 = arith.constant 1.000000e+00 : f32
    %340 = vector.broadcast %cst_141 : f32 to vector<16x128xf32>
    %341 = arith.addf %340, %339 : vector<16x128xf32>
    %342 = arith.mulf %336, %341 : vector<16x128xf32>
    %c1_142 = arith.constant 1 : index
    %c0_143 = arith.constant 0 : index
    %c0_144 = arith.constant 0 : index
    %343 = vector.load %arg12[%c1_142, %c0_143, %c0_144] : memref<2x128x32xf32, #tpu.memory_space<vmem>>, vector<1x128x32xf32>
    %344 = vector.shape_cast %343 : vector<1x128x32xf32> to vector<128x32xf32>
    %cst_145 = arith.constant dense<0.000000e+00> : vector<16x32xf32>
    %345 = tpu.matmul %342, %344, %cst_145 {dimension_numbers = #tpu.dot_dimension_numbers<[1], [0], [0], [1], [0, 0, 1, 1], [], []>} : vector<16x128xf32>, vector<128x32xf32>, vector<16x32xf32> -> vector<16x32xf32>
    %c1_146 = arith.constant 1 : index
    %c0_147 = arith.constant 0 : index
    %c0_148 = arith.constant 0 : index
    %346 = vector.load %arg13[%c1_146, %c0_147, %c0_148] : memref<2x1x32xf32, #tpu.memory_space<vmem>>, vector<1x1x32xf32>
    %347 = vector.shape_cast %346 : vector<1x1x32xf32> to vector<1x32xf32>
    %348 = vector.broadcast %347 : vector<1x32xf32> to vector<16x32xf32>
    %349 = arith.addf %345, %348 : vector<16x32xf32>
    %350 = arith.addf %327, %349 : vector<16x32xf32>
    %c1_149 = arith.constant 1 : index
    %c0_150 = arith.constant 0 : index
    %c0_151 = arith.constant 0 : index
    %351 = vector.load %arg14[%c1_149, %c0_150, %c0_151] : memref<2x1x32xf32, #tpu.memory_space<vmem>>, vector<1x1x32xf32>
    %352 = vector.shape_cast %351 : vector<1x1x32xf32> to vector<1x32xf32>
    %c1_152 = arith.constant 1 : index
    %c0_153 = arith.constant 0 : index
    %c0_154 = arith.constant 0 : index
    %353 = vector.load %arg15[%c1_152, %c0_153, %c0_154] : memref<2x1x32xf32, #tpu.memory_space<vmem>>, vector<1x1x32xf32>
    %354 = vector.shape_cast %353 : vector<1x1x32xf32> to vector<1x32xf32>
    %cst_155 = arith.constant dense<0.000000e+00> : vector<16xf32>
    %355 = vector.multi_reduction <add>, %350, %cst_155 [1] : vector<16x32xf32> to vector<16xf32>
    %356 = vector.shape_cast %355 : vector<16xf32> to vector<16x1xf32>
    %cst_156 = arith.constant 3.200000e+01 : f32
    %357 = vector.broadcast %cst_156 : f32 to vector<16x1xf32>
    %358 = arith.divf %356, %357 : vector<16x1xf32>
    %359 = vector.broadcast %358 : vector<16x1xf32> to vector<16x32xf32>
    %360 = arith.subf %350, %359 : vector<16x32xf32>
    %361 = arith.mulf %360, %360 : vector<16x32xf32>
    %cst_157 = arith.constant dense<0.000000e+00> : vector<16xf32>
    %362 = vector.multi_reduction <add>, %361, %cst_157 [1] : vector<16x32xf32> to vector<16xf32>
    %363 = vector.shape_cast %362 : vector<16xf32> to vector<16x1xf32>
    %cst_158 = arith.constant 3.200000e+01 : f32
    %364 = vector.broadcast %cst_158 : f32 to vector<16x1xf32>
    %365 = arith.divf %363, %364 : vector<16x1xf32>
    %cst_159 = arith.constant 9.99999996E-13 : f32
    %366 = vector.broadcast %cst_159 : f32 to vector<16x1xf32>
    %367 = arith.addf %365, %366 : vector<16x1xf32>
    %368 = math.rsqrt %367 : vector<16x1xf32>
    %369 = vector.broadcast %368 : vector<16x1xf32> to vector<16x32xf32>
    %370 = arith.mulf %360, %369 : vector<16x32xf32>
    %371 = vector.broadcast %352 : vector<1x32xf32> to vector<16x32xf32>
    %372 = arith.mulf %371, %370 : vector<16x32xf32>
    %373 = vector.broadcast %354 : vector<1x32xf32> to vector<16x32xf32>
    %374 = arith.addf %372, %373 : vector<16x32xf32>
    %375 = tpu.iota {dimensions = array<i32: 0>} : vector<2x16xi32>
    %376 = tpu.iota {dimensions = array<i32: 1>} : vector<2x16xi32>
    %c8_i32 = arith.constant 8 : i32
    %377 = vector.broadcast %c8_i32 : i32 to vector<2x16xi32>
    %378 = arith.muli %375, %377 : vector<2x16xi32>
    %379 = arith.cmpi eq, %376, %378 : vector<2x16xi32>
    %380 = arith.extui %379 : vector<2x16xi1> to vector<2x16xi32>
    %381 = arith.sitofp %380 : vector<2x16xi32> to vector<2x16xf32>
    %cst_160 = arith.constant dense<0.000000e+00> : vector<2x32xf32>
    %382 = tpu.matmul %381, %374, %cst_160 {dimension_numbers = #tpu.dot_dimension_numbers<[1], [0], [0], [1], [0, 0, 1, 1], [], []>} : vector<2x16xf32>, vector<16x32xf32>, vector<2x32xf32> -> vector<2x32xf32>
    %c0_161 = arith.constant 0 : index
    %c0_162 = arith.constant 0 : index
    %383 = vector.load %arg16[%c0_161, %c0_162] : memref<32x32xf32, #tpu.memory_space<vmem>>, vector<32x32xf32>
    %cst_163 = arith.constant dense<0.000000e+00> : vector<2x32xf32>
    %384 = tpu.matmul %382, %383, %cst_163 {dimension_numbers = #tpu.dot_dimension_numbers<[1], [0], [0], [1], [0, 0, 1, 1], [], []>} : vector<2x32xf32>, vector<32x32xf32>, vector<2x32xf32> -> vector<2x32xf32>
    %c0_164 = arith.constant 0 : index
    %c0_165 = arith.constant 0 : index
    %385 = vector.load %arg17[%c0_164, %c0_165] : memref<1x32xf32, #tpu.memory_space<vmem>>, vector<1x32xf32>
    %386 = vector.broadcast %385 : vector<1x32xf32> to vector<2x32xf32>
    %387 = arith.addf %384, %386 : vector<2x32xf32>
    %388 = math.tanh %387 : vector<2x32xf32>
    %c0_166 = arith.constant 0 : index
    %c0_167 = arith.constant 0 : index
    %389 = vector.load %arg18[%c0_166, %c0_167] : memref<32x2xf32, #tpu.memory_space<vmem>>, vector<32x2xf32>
    %cst_168 = arith.constant dense<0.000000e+00> : vector<2x2xf32>
    %390 = tpu.matmul %388, %389, %cst_168 {dimension_numbers = #tpu.dot_dimension_numbers<[1], [0], [0], [1], [0, 0, 1, 1], [], []>} : vector<2x32xf32>, vector<32x2xf32>, vector<2x2xf32> -> vector<2x2xf32>
    %c0_169 = arith.constant 0 : index
    %c0_170 = arith.constant 0 : index
    %391 = vector.load %arg19[%c0_169, %c0_170] : memref<1x2xf32, #tpu.memory_space<vmem>>, vector<1x2xf32>
    %392 = vector.broadcast %391 : vector<1x2xf32> to vector<2x2xf32>
    %393 = arith.addf %390, %392 : vector<2x2xf32>
    %c0_171 = arith.constant 0 : index
    %c0_172 = arith.constant 0 : index
    %394 = vector.load %arg20[%c0_171, %c0_172] : memref<2x2xf32, #tpu.memory_space<vmem>>, vector<2x2xf32>
    tpu.vector_store %arg20[%c0_171, %c0_172], %393 {strides = array<i32>} : memref<2x2xf32, #tpu.memory_space<vmem>>, vector<2x2xf32>,
    return
  }
}

</mosaic_0001>

<bundles_post_ra>
// kernel: classifier_forward.1
= control target key start
LH: loop header
LB: loop body
LE: loop exit
PB: predicated region body
PF: predicated region fallthrough
CT: control target
= control target key end

     0   :  { %s5757_s0 = inlined_call_operand.vmem [shape: f32[2,8,32], index: 0, kind: input, shape index: {}]   ;;  %s5758_s1 = inlined_call_operand.vmem [shape: f32[2,1,8], index: 1, kind: input, shape index: {}]   ;;  %s5759_s2 = inlined_call_operand.vmem [shape: f32[1,32], index: 2, kind: input, shape index: {}]   ;;  %s5760_s3 = inlined_call_operand.vmem [shape: f32[1,32], index: 3, kind: input, shape index: {}]   ;;  %s5761_s4 = inlined_call_operand.vmem [shape: f32[2,32,96], index: 4, kind: input, shape index: {}]   ;;  %s5762_s5 = inlined_call_operand.vmem [shape: f32[2,1,96], index: 5, kind: input, shape index: {}]   ;;  %s5763_s6 = inlined_call_operand.vmem [shape: f32[2,32,32], index: 6, kind: input, shape index: {}]   ;;  %s5764_s7 = inlined_call_operand.vmem [shape: f32[2,1,32], index: 7, kind: input, shape index: {}]   ;;  %s5765_s8 = inlined_call_operand.vmem [shape: f32[2,1,32], index: 8, kind: input, shape index: {}]   ;;  %s5766_s9 = inlined_call_operand.vmem [shape: f32[2,1,32], index: 9, kind: input, shape index: {}]   ;;  %s5767_s10 = inlined_call_operand.vmem [shape: f32[2,32,128], index: 10, kind: input, shape index: {}]   ;;  %s5768_s11 = inlined_call_operand.vmem [shape: f32[2,1,128], index: 11, kind: input, shape index: {}]   ;;  %s5769_s12 = inlined_call_operand.vmem [shape: f32[2,128,32], index: 12, kind: input, shape index: {}]   ;;  %s5770_s13 = inlined_call_operand.vmem [shape: f32[2,1,32], index: 13, kind: input, shape index: {}]   ;;  %s5771_s14 = inlined_call_operand.vmem [shape: f32[2,1,32], index: 14, kind: input, shape index: {}]   ;;  %s5772_s15 = inlined_call_operand.vmem [shape: f32[2,1,32], index: 15, kind: input, shape index: {}]   ;;  %s5773_s16 = inlined_call_operand.vmem [shape: f32[32,32], index: 16, kind: input, shape index: {}]   ;;  %s5774_s17 = inlined_call_operand.vmem [shape: f32[1,32], index: 17, kind: input, shape index: {}]   ;;  %s5775_s18 = inlined_call_operand.vmem [shape: f32[32,2], index: 18, kind: input, shape index: {}]   ;;  %s5776_s19 = inlined_call_operand.vmem [shape: f32[1,2], index: 19, kind: input, shape index: {}]   ;;  %s5777_s20 = inlined_call_operand.hbm [shape: f32[2,2], index: 20, kind: output, shape index: {}]  }
   0x1   :  { %5801 = sst [smem:[#allocation5_spill]] %s5757_s0 }
   0x2   :  { %5802 = sst [smem:[#allocation6_spill]] %s5758_s1 }
   0x3   :  { %5803 = sst [smem:[#allocation7_spill]] %s5759_s2 }
   0x4   :  { %5804 = sst [smem:[#allocation8_spill]] %s5760_s3 }
   0x5   :  { %5805 = sst [smem:[#allocation9_spill]] %s5761_s4 }
   0x6   :  { %s5806_s23 = sld [smem:[#allocation5_spill]]  ;;  %vm76_vm0 = vcmask 261120  }
   0xc   :  { %v72_v0 = vld [vmem:[%s5806_s23] sm:$0xff]  ;;  %v73_v1 = vld [vmem:[%s5806_s23 + $0x8] sm:$0xff] }
   0xd   :  { %25 = vsyncpa [#allocation3], 0  ;;  %v77_v2 = vsel %vm76_vm0, %v72_v0, 0.0  ;;  %v80_v3 = vsel %vm76_vm0, %v73_v1, 0.0  ;;  %s5807_s26 = sld [smem:[#allocation9_spill]]  ;;  %s5808_s22 = sld [smem:[#allocation7_spill]]  ;;  %v371_v44 = vlaneseq }
   0xe   :  { %78 = vadd.xlane.f32.xlu0 %v77_v2  ;;  %s5809_s2 = sld [smem:[#allocation8_spill]]  ;;  %v4950_v36 = vmov 0.0   ;;  %vm4951_vm1 = vmmov 0   ;;  %v4095_v37 = vld [vmem:[%s5762_s5] ss:$0 sm:$0xff]  ;;  %s4952_s27 = smov 96  }
   0xf   :  { %4383 = vmatprep.subr.mxu0 %v4950_v36  ;;  %4385 = vmatprep.mubr.msk.f32.mxu0 %vm4951_vm1, %v4950_v36  ;;  %vm215_vm2 = vcmask 64512   ;;  %s5810_s29 = sld [smem:[#allocation6_spill]]  ;;  %v5142_v47 = vshrl.u32 %v371_v44, 7  ;;  %s4953_s21 = smov 64   ;;  %vm1585_vm3 = vcmask 130048   ;;  %vm1588_vm4 = vcmask 195584  }
  0x10   :  { %s4954_s1 = smov 88   ;;  %s5799_s23 = smov 56   ;;  %vm4077_vm6 = vcmask 9216  }
  0x11   :  { %v373_v50 = vsub.s32 0, %v5142_v47  ;;  %s5797_s24 = smov 80   ;;  %s5791_s25 = smov 48  }
  0x12   :  { %81 = vadd.xlane.f32.xlu0 %v80_v3  ;;  %s5789_s3 = smov 72   ;;  %s5787_s28 = smov 104  }
  0x13   :  { %v120_v14 = vld [vmem:[%s5807_s26] sm:$0xff]  ;;  %v121_v15 = vld [vmem:[%s5807_s26 + $0x8] sm:$0xff]  ;;  %v122_v16 = vld [vmem:[%s5807_s26 + $0x10] sm:$0xff]  ;;  %s5783_s4 = smov 40   ;;  %s5785_s30 = smov 16  }
  0x14   :  { %v4687_v17 = vpack.c.bf16 %v121_v15, %v120_v14  ;;  %v123_v18 = vld [vmem:[%s5807_s26 + $0x18] sm:$0xff]  ;;  %v4093_v27 = vld [vmem:[%s5808_s22] ss:$0 sm:$0xff]  ;;  %s4955_s22 = smov 120   ;;  %s5819_s0 = smov 16  }
  0x15   :  { %v4691_v19 = vpack.c.bf16 %v123_v18, %v122_v16  ;;  %v4094_v29 = vld [vmem:[%s5809_s2] ss:$0 sm:$0xff]  ;;  %v67_v48 = vld [vmem:[%s5810_s29 + $0x1] sm:$0x1]  ;;  %s5793_s2 = smov 112  }
  0x16   :  { %4688 = vmatprep.subr.bf16.mxu1 %v4687_v17  ;;  %v66_v45 = vld [vmem:[%s5810_s29] sm:$0x1]  ;;  %v69_v51 = vsub.f32 1.0, %v67_v48  ;;  %s5781_s29 = smov 8  }
  0x17   :  { %4690 = vmatpush3.bf16.msra.mxu1 %v4687_v17  ;;  %v68_v46 = vsub.f32 1.0, %v66_v45 }
  0x18   :  { %4692 = vmatprep.subr.bf16.mxu1 %v4691_v19  ;;  %v71_v53 = vmul.f32 10000.0, %v69_v51 }
  0x19   :  { %v70_v49 = vmul.f32 10000.0, %v68_v46 }
  0x1a   :  { %v5151_v58 = vrot.slane %v71_v53, %v373_v50 }
  0x1b   :  { %4694 = vmatpush3.bf16.msra.mxu1 %v4691_v19  ;;  %v5148_v52 = vrot.slane %v70_v49, %v373_v50 }
  0x1c   :  { %4373 = vmatprep.subr.mxu1 %v4950_v36 }
  0x9b   :  { %v79_v4 = vpop.xlane.xlu0 %78 }
  0x9c   :  { %v84_v5 = vmul.f32 0.03125, %v79_v4 }
  0x9e   :  { %v86_v6 = vsub.f32 %v72_v0, %v84_v5 }
  0x9f   :  { %v82_v7 = vpop.xlane.xlu0 %81 }
  0xa0   :  { %v85_v8 = vmul.f32 0.03125, %v82_v7  ;;  %v88_v9 = vmul.f32 %v86_v6, %v86_v6 }
  0xa2   :  { %v87_v10 = vsub.f32 %v73_v1, %v85_v8  ;;  %v90_v11 = vsel %vm76_vm0, %v88_v9, 0.0 }
  0xa3   :  { %91 = vadd.xlane.f32.xlu1 %v90_v11 }
  0xa4   :  { %v89_v12 = vmul.f32 %v87_v10, %v87_v10 }
  0xa6   :  { %v93_v13 = vsel %vm76_vm0, %v89_v12, 0.0 }
  0xa7   :  { %94 = vadd.xlane.f32.xlu1 %v93_v13 }
 0x130   :  { %v92_v20 = vpop.xlane.xlu1 %91 }
 0x131   :  { %v96_v21 = vmul.f32 0.03125, %v92_v20 }
 0x133   :  { %v98_v22 = vadd.f32 1e-12, %v96_v21 }
 0x134   :  { %v95_v23 = vpop.xlane.xlu1 %94 }
 0x135   :  { %4832 = vrsqrt.f32 %v98_v22  ;;  %v97_v24 = vmul.f32 0.03125, %v95_v23 }
 0x137   :  { %v99_v25 = vadd.f32 1e-12, %v97_v24 }
 0x139   :  { %4834 = vrsqrt.f32 %v99_v25 }
 0x13f   :  { %v4833_v26 = vpop.eup %4832 }
 0x140   :  { %v102_v28 = vmul.f32 %v4833_v26, %v86_v6 }
 0x142   :  { %v110_v30 = vmul.f32 %v4093_v27, %v102_v28 }
 0x143   :  { %v4835_v31 = vpop.eup %4834 }
 0x144   :  { %v103_v32 = vmul.f32 %v4835_v31, %v87_v10  ;;  %v5101_v33 = vadd.f32 %v4094_v29, %v110_v30 }
 0x146   :  { %v111_v34 = vmul.f32 %v4093_v27, %v103_v32  ;;  %4370 = vmatprep.mubr.msk.f32.mxu1 %vm76_vm0, %v5101_v33 }
 0x148   :  { %v5105_v35 = vadd.f32 %v4094_v29, %v111_v34 }
 0x14a   :  { %4371 = vmatmul.mubr.msk.f32.vlgmr.msra.gmra.mrb[0].mxu1 %vm76_vm0, %v5105_v35 }
 0x14b   :  { %4375 = vmatprep.mubr.msk.f32.mxu1 %vm4951_vm1, %v4950_v36 }
 0x21d   :  { %v4372_v38 = vpop.f32.mrb[0].mxu1 }
 0x21e   :  { %v5118_v39 = vadd.f32 %v4372_v38, %v4095_v37  ;;  %v203_v40 = vpop.f32.mrb[1].mxu1 }
 0x21f   :  { %v5120_v41 = vadd.f32 %v4095_v37, %v203_v40 }
 0x220   :  { %291 = vrot.lane.b32.xlu1 %v5118_v39, %s4952_s27 }
 0x221   :  { %213 = vrot.lane.b32.xlu0 %v5120_v41, %s4952_s27 }
 0x292   :  { %v292_v43 = vpop.permute.xlu1 %291 }
 0x293   :  { %v214_v42 = vpop.permute.xlu0 %213 }
 0x294   :  { %4374 = vmatpush3.xpose.msk.msra.mxu1 %vm215_vm2, %v214_v42 }
 0x295   :  { %4378 = vmatprep.subr.mxu1 %v4950_v36 }
 0x297   :  { %4376 = vmatmul.mubr.msk.f32.vlgmr.msra.gmra.mrb[2].mxu1 %vm215_vm2, %v5120_v41 }
 0x298   :  { %4379 = vmatpush3.xpose.msk.msra.mxu1 %vm215_vm2, %v292_v43  ;;  %4380 = vmatprep.mubr.msk.f32.mxu1 %vm4951_vm1, %v4950_v36 }
 0x299   :  { %4398 = vmatprep.subr.mxu1 %v4950_v36 }
 0x29b   :  { %4381 = vmatmul.mubr.msk.f32.vlgmr.msra.gmra.mrb[4].mxu1 %vm215_vm2, %v5118_v39 }
 0x29c   :  { %4400 = vmatprep.mubr.msk.f32.mxu1 %vm4951_vm1, %v4950_v36 }
 0x36a   :  { %v286_v54 = vpop.f32.mrb[2].mxu1 }
 0x36b   :  { %v367_v55 = vmul.f32 0.35355338, %v286_v54  ;;  %v4377_v56 = vpop.f32.mrb[3].mxu1 }
 0x36d   :  { %v381_v57 = vsub.f32 %v367_v55, %v5148_v52 }
 0x36e   :  { %v363_v59 = vpop.f32.mrb[4].mxu1 }
 0x36f   :  { %v368_v60 = vmul.f32 0.35355338, %v363_v59  ;;  %v4382_v61 = vpop.f32.mrb[5].mxu1  ;;  %v383_v62 = vsel %vm215_vm2, %v381_v57, -inf }
 0x370   :  { %384 = vmax.xlane.f32.xlu1 %v383_v62 }
 0x371   :  { %v382_v63 = vsub.f32 %v368_v60, %v5151_v58 }
 0x373   :  { %v386_v0 = vsel %vm215_vm2, %v382_v63, -inf }
 0x374   :  { %387 = vmax.xlane.f32.xlu0 %v386_v0 }
 0x381   :  { %481 = vrot.lane.b32.xlu1 %v5118_v39, %s4953_s21 }
 0x385   :  { %559 = vrot.lane.b32.xlu1 %v5120_v41, %s4954_s1 }
 0x389   :  { %637 = vrot.lane.b32.xlu1 %v5118_v39, %s4954_s1 }
 0x3fd   :  { %v385_v1 = vpop.xlane.xlu1 %384 }
 0x3fe   :  { %v389_v2 = vsub.f32 %v381_v57, %v385_v1 }
 0x400   :  { %v391_v3 = vmul.f32 1.442695, %v389_v2 }
 0x401   :  { %v388_v4 = vpop.xlane.xlu0 %387  ;;  %v482_v5 = vpop.permute.xlu1 %481 }
 0x402   :  { %4836 = vpow2.f32 %v391_v3  ;;  %v390_v6 = vsub.f32 %v382_v63, %v388_v4 }
 0x404   :  { %v393_v7 = vmul.f32 1.442695, %v390_v6 }
 0x405   :  { %v560_v8 = vpop.permute.xlu1 %559 }
 0x406   :  { %4838 = vpow2.f32 %v393_v7 }
 0x409   :  { %v638_v9 = vpop.permute.xlu1 %637 }
 0x40a   :  { %4399 = vmatpush3.xpose.msk.msra.mxu1 %vm215_vm2, %v638_v9 }
 0x40b   :  { %4408 = vmatprep.subr.mxu1 %v4950_v36 }
 0x40c   :  { %v4837_v10 = vpop.eup %4836 }
 0x40d   :  { %v395_v11 = vsel %vm215_vm2, %v4837_v10, 0.0 }
 0x40e   :  { %396 = vadd.xlane.f32.xlu0 %v395_v11 }
 0x410   :  { %v4839_v12 = vpop.eup %4838 }
 0x411   :  { %v398_v13 = vsel %vm215_vm2, %v4839_v12, 0.0 }
 0x412   :  { %399 = vadd.xlane.f32.xlu1 %v398_v13 }
 0x423   :  { %635 = vrot.lane.b32.xlu1 %v5118_v39, %s4955_s22 }
 0x424   :  { %405 = vrot.lane.b32.xlu0 %v5120_v41, %s4953_s21 }
 0x428   :  { %557 = vrot.lane.b32.xlu0 %v5120_v41, %s4955_s22 }
 0x49b   :  { %v397_v14 = vpop.xlane.xlu0 %396 }
 0x49c   :  { %4840 = vrcp.f32 %v397_v14 }
 0x49f   :  { %v406_v15 = vpop.permute.xlu0 %405  ;;  %v400_v16 = vpop.xlane.xlu1 %399 }
 0x4a0   :  { %4842 = vrcp.f32 %v400_v16  ;;  %4384 = vmatpush3.msra.mxu0 %v406_v15 }
 0x4a1   :  { %4388 = vmatprep.subr.mxu0 %v4950_v36 }
 0x4a3   :  { %v636_v17 = vpop.permute.xlu1 %635  ;;  %v558_v22 = vpop.permute.xlu0 %557 }
 0x4a4   :  { %4401 = vmatmul.mubr.msk.f32.vlgmr.msra.gmra.mrb[6].mxu1 %vm215_vm2, %v636_v17 }
 0x4a5   :  { %4410 = vmatprep.mubr.msk.f32.mxu1 %vm4951_vm1, %v4950_v36 }
 0x4a6   :  { %v4841_v18 = vpop.eup %4840 }
 0x4a7   :  { %v403_v19 = vmul.f32 %v4841_v18, %v4837_v10 }
 0x4a9   :  { %4386 = vmatmul.mubr.msk.f32.vlgmr.msra.gmra.mrb[0].mxu0 %vm215_vm2, %v403_v19 }
 0x4aa   :  { %v4843_v20 = vpop.eup %4842  ;;  %4389 = vmatpush3.msra.mxu0 %v482_v5  ;;  %4390 = vmatprep.mubr.msk.f32.mxu0 %vm4951_vm1, %v4950_v36 }
 0x4ab   :  { %v404_v21 = vmul.f32 %v4843_v20, %v4839_v12  ;;  %4393 = vmatprep.subr.mxu0 %v4950_v36 }
 0x4ad   :  { %4391 = vmatmul.mubr.msk.f32.vlgmr.msra.gmra.mrb[2].mxu0 %vm215_vm2, %v404_v21 }
 0x4ae   :  { %4395 = vmatprep.mubr.msk.f32.mxu0 %vm4951_vm1, %v4950_v36 }
 0x4b1   :  { %4394 = vmatpush3.xpose.msk.msra.mxu0 %vm215_vm2, %v560_v8 }
 0x4b2   :  { %4403 = vmatprep.subr.mxu0 %v4950_v36 }
 0x4b4   :  { %4396 = vmatmul.mubr.msk.f32.vlgmr.msra.gmra.mrb[4].mxu0 %vm215_vm2, %v558_v22 }
 0x4b5   :  { %4405 = vmatprep.mubr.msk.f32.mxu0 %vm4951_vm1, %v4950_v36 }
 0x577   :  { %v709_v23 = vpop.f32.mrb[6].mxu1 }
 0x578   :  { %v714_v24 = vmul.f32 0.35355338, %v709_v23  ;;  %v4402_v25 = vpop.f32.mrb[7].mxu1 }
 0x57a   :  { %v716_v26 = vsub.f32 %v714_v24, %v5151_v58 }
 0x57c   :  { %v5189_v27 = vpop.f32.mrb[0].mxu0  ;;  %v720_v28 = vsel %vm215_vm2, %v716_v26, -inf }
 0x57d   :  { %v4387_v29 = vpop.f32.mrb[1].mxu0  ;;  %721 = vmax.xlane.f32.xlu1 %v720_v28 }
 0x580   :  { %v5192_v30 = vpop.f32.mrb[2].mxu0 }
 0x581   :  { %v4392_v31 = vpop.f32.mrb[3].mxu0 }
 0x587   :  { %v631_v32 = vpop.f32.mrb[4].mxu0 }
 0x588   :  { %v713_v34 = vmul.f32 0.35355338, %v631_v32  ;;  %v4397_v37 = vpop.f32.mrb[5].mxu0 }
 0x58a   :  { %v715_v38 = vsub.f32 %v713_v34, %v5148_v52 }
 0x58c   :  { %v717_v40 = vsel %vm215_vm2, %v715_v38, -inf }
 0x58d   :  { %718 = vmax.xlane.f32.xlu0 %v717_v40 }
 0x58e   :  { %815 = vrot.lane.b32.xlu1 %v5118_v39, %s5799_s23 }
 0x592   :  { %893 = vrot.lane.b32.xlu1 %v5120_v41, %s5797_s24 }
 0x596   :  { %971 = vrot.lane.b32.xlu1 %v5118_v39, %s5797_s24  ;;  %s5816_s24 = smov 104  }
 0x59a   :  { %969 = vrot.lane.b32.xlu1 %v5118_v39, %s5793_s2 }
 0x60a   :  { %v722_v42 = vpop.xlane.xlu1 %721 }
 0x60b   :  { %v724_v43 = vsub.f32 %v716_v26, %v722_v42 }
 0x60d   :  { %v727_v45 = vmul.f32 1.442695, %v724_v43 }
 0x60e   :  { %v816_v46 = vpop.permute.xlu1 %815 }
 0x60f   :  { %4844 = vpow2.f32 %v727_v45  ;;  %4409 = vmatpush3.msra.mxu1 %v816_v46 }
 0x610   :  { %4418 = vmatprep.subr.mxu1 %v4950_v36 }
 0x612   :  { %v894_v59 = vpop.permute.xlu1 %893 }
 0x616   :  { %v972_v61 = vpop.permute.xlu1 %971 }
 0x619   :  { %v4845_v48 = vpop.eup %4844 }
 0x61a   :  { %v732_v49 = vsel %vm215_vm2, %v4845_v48, 0.0  ;;  %v719_v50 = vpop.xlane.xlu0 %718  ;;  %v970_v63 = vpop.permute.xlu1 %969 }
 0x61b   :  { %733 = vadd.xlane.f32.xlu0 %v732_v49  ;;  %v723_v51 = vsub.f32 %v715_v38, %v719_v50 }
 0x61d   :  { %v725_v53 = vmul.f32 1.442695, %v723_v51 }
 0x61f   :  { %4846 = vpow2.f32 %v725_v53 }
 0x629   :  { %v4847_v54 = vpop.eup %4846 }
 0x62a   :  { %v729_v55 = vsel %vm215_vm2, %v4847_v54, 0.0 }
 0x631   :  { %739 = vrot.lane.b32.xlu0 %v5120_v41, %s5799_s23 }
 0x650   :  { %730 = vadd.xlane.f32.xlu0 %v729_v55 }
 0x666   :  { %891 = vrot.lane.b32.xlu0 %v5120_v41, %s5793_s2 }
 0x6a8   :  { %v734_v56 = vpop.xlane.xlu0 %733 }
 0x6a9   :  { %4848 = vrcp.f32 %v734_v56 }
 0x6ac   :  { %v740_v57 = vpop.permute.xlu0 %739 }
 0x6ad   :  { %4404 = vmatpush3.msra.mxu0 %v740_v57 }
 0x6ae   :  { %4413 = vmatprep.subr.mxu0 %v4950_v36 }
 0x6b3   :  { %v4849_v60 = vpop.eup %4848 }
 0x6b4   :  { %v738_v62 = vmul.f32 %v4849_v60, %v4845_v48 }
 0x6b6   :  { %4411 = vmatmul.mubr.msk.f32.vlgmr.msra.gmra.mrb[8].mxu1 %vm215_vm2, %v738_v62 }
 0x6b7   :  { %4419 = vmatpush3.xpose.msk.msra.mxu1 %vm215_vm2, %v972_v61  ;;  %4420 = vmatprep.mubr.msk.f32.mxu1 %vm4951_vm1, %v4950_v36 }
 0x6b8   :  { %4428 = vmatprep.subr.mxu1 %v4950_v36 }
 0x6ba   :  { %4421 = vmatmul.mubr.msk.f32.vlgmr.msra.gmra.mrb[10].mxu1 %vm215_vm2, %v970_v63 }
 0x6bb   :  { %4430 = vmatprep.mubr.msk.f32.mxu1 %vm4951_vm1, %v4950_v36 }
 0x6dd   :  { %v731_v0 = vpop.xlane.xlu0 %730 }
 0x6de   :  { %4850 = vrcp.f32 %v731_v0 }
 0x6e1   :  { %v892_v3 = vpop.permute.xlu0 %891 }
 0x6e8   :  { %v4851_v1 = vpop.eup %4850 }
 0x6e9   :  { %v737_v2 = vmul.f32 %v4851_v1, %v4847_v54 }
 0x6eb   :  { %4406 = vmatmul.mubr.msk.f32.vlgmr.msra.gmra.mrb[6].mxu0 %vm215_vm2, %v737_v2 }
 0x6ec   :  { %4414 = vmatpush3.xpose.msk.msra.mxu0 %vm215_vm2, %v894_v59  ;;  %4415 = vmatprep.mubr.msk.f32.mxu0 %vm4951_vm1, %v4950_v36 }
 0x6ed   :  { %4423 = vmatprep.subr.mxu0 %v4950_v36 }
 0x6ef   :  { %4416 = vmatmul.mubr.msk.f32.vlgmr.msra.gmra.mrb[8].mxu0 %vm215_vm2, %v892_v3 }
 0x6f0   :  { %4425 = vmatprep.mubr.msk.f32.mxu0 %vm4951_vm1, %v4950_v36 }
 0x789   :  { %v5228_v4 = vpop.f32.mrb[8].mxu1 }
 0x78a   :  { %v4412_v5 = vpop.f32.mrb[9].mxu1 }
 0x78d   :  { %v1043_v6 = vpop.f32.mrb[10].mxu1 }
 0x78e   :  { %v1048_v7 = vmul.f32 0.35355338, %v1043_v6  ;;  %v4422_v8 = vpop.f32.mrb[11].mxu1 }
 0x790   :  { %v1050_v9 = vsub.f32 %v1048_v7, %v5151_v58 }
 0x792   :  { %v1054_v10 = vsel %vm215_vm2, %v1050_v9, -inf }
 0x793   :  { %1055 = vmax.xlane.f32.xlu1 %v1054_v10 }
 0x7a4   :  { %1149 = vrot.lane.b32.xlu1 %v5118_v39, %s5791_s25 }
 0x7a8   :  { %1227 = vrot.lane.b32.xlu1 %v5120_v41, %s5789_s3 }
 0x7ac   :  { %1305 = vrot.lane.b32.xlu1 %v5118_v39, %s5789_s3 }
 0x7b0   :  { %1303 = vrot.lane.b32.xlu1 %v5118_v39, %s5787_s28 }
 0x7be   :  { %v5240_v11 = vpop.f32.mrb[6].mxu0 }
 0x7bf   :  { %v4407_v12 = vpop.f32.mrb[7].mxu0 }
 0x7c2   :  { %v965_v13 = vpop.f32.mrb[8].mxu0 }
 0x7c3   :  { %v1047_v14 = vmul.f32 0.35355338, %v965_v13  ;;  %v4417_v15 = vpop.f32.mrb[9].mxu0 }
 0x7c5   :  { %v1049_v16 = vsub.f32 %v1047_v14, %v5148_v52 }
 0x7c7   :  { %v1051_v17 = vsel %vm215_vm2, %v1049_v16, -inf }
 0x7c8   :  { %1052 = vmax.xlane.f32.xlu0 %v1051_v17 }
 0x820   :  { %v1056_v18 = vpop.xlane.xlu1 %1055 }
 0x821   :  { %v1058_v19 = vsub.f32 %v1050_v9, %v1056_v18  ;;  %v1592_v18 = vld [vmem:[%s5763_s6 + $0x8] sm:$0xff] }
 0x823   :  { %v1061_v20 = vmul.f32 1.442695, %v1058_v19  ;;  %v1593_v19 = vld [vmem:[%s5763_s6 + $0x10] sm:$0xff] }
 0x824   :  { %v1150_v21 = vpop.permute.xlu1 %1149 }
 0x825   :  { %4852 = vpow2.f32 %v1061_v20  ;;  %4429 = vmatpush3.msra.mxu1 %v1150_v21  ;;  %v1594_v21 = vld [vmem:[%s5763_s6 + $0x18] sm:$0xff] }
 0x826   :  { %4438 = vmatprep.subr.mxu1 %v4950_v36 }
 0x828   :  { %v1228_v34 = vpop.permute.xlu1 %1227 }
 0x82c   :  { %v1306_v38 = vpop.permute.xlu1 %1305 }
 0x82f   :  { %v4853_v22 = vpop.eup %4852 }
 0x830   :  { %v1066_v23 = vsel %vm215_vm2, %v4853_v22, 0.0  ;;  %v1304_v42 = vpop.permute.xlu1 %1303 }
 0x831   :  { %1067 = vadd.xlane.f32.xlu0 %v1066_v23 }
 0x847   :  { %1073 = vrot.lane.b32.xlu0 %v5120_v41, %s5791_s25 }
 0x855   :  { %v1053_v24 = vpop.xlane.xlu0 %1052 }
 0x856   :  { %v1057_v25 = vsub.f32 %v1049_v16, %v1053_v24 }
 0x858   :  { %v1059_v26 = vmul.f32 1.442695, %v1057_v25 }
 0x85a   :  { %4854 = vpow2.f32 %v1059_v26 }
 0x864   :  { %v4855_v28 = vpop.eup %4854 }
 0x865   :  { %v1063_v29 = vsel %vm215_vm2, %v4855_v28, 0.0 }
 0x866   :  { %1064 = vadd.xlane.f32.xlu0 %v1063_v29 }
 0x87c   :  { %1225 = vrot.lane.b32.xlu0 %v5120_v41, %s5787_s28 }
 0x8be   :  { %v1068_v31 = vpop.xlane.xlu0 %1067 }
 0x8bf   :  { %4856 = vrcp.f32 %v1068_v31 }
 0x8c2   :  { %v1074_v32 = vpop.permute.xlu0 %1073 }
 0x8c3   :  { %4424 = vmatpush3.msra.mxu0 %v1074_v32 }
 0x8c4   :  { %4433 = vmatprep.subr.mxu0 %v4950_v36 }
 0x8c9   :  { %v4857_v37 = vpop.eup %4856 }
 0x8ca   :  { %v1072_v40 = vmul.f32 %v4857_v37, %v4853_v22  ;;  %v4699_v22 = vpack.c.bf16 %v1594_v21, %v1593_v19  ;;  %v4125_v21 = vld [vmem:[%s5765_s8] ss:$0 sm:$0xff] }
 0x8cc   :  { %4431 = vmatmul.mubr.msk.f32.vlgmr.msra.gmra.mrb[12].mxu1 %vm215_vm2, %v1072_v40 }
 0x8cd   :  { %4439 = vmatpush3.xpose.msk.msra.mxu1 %vm215_vm2, %v1306_v38  ;;  %4440 = vmatprep.mubr.msk.f32.mxu1 %vm4951_vm1, %v4950_v36 }
 0x8ce   :  { %4448 = vmatprep.subr.mxu1 %v4950_v36 }
 0x8d0   :  { %4441 = vmatmul.mubr.msk.f32.vlgmr.msra.gmra.mrb[14].mxu1 %vm215_vm2, %v1304_v42 }
 0x8d1   :  { %4450 = vmatprep.mubr.msk.f32.mxu1 %vm4951_vm1, %v4950_v36 }
 0x8f3   :  { %v1065_v43 = vpop.xlane.xlu0 %1064 }
 0x8f4   :  { %4858 = vrcp.f32 %v1065_v43 }
 0x8f7   :  { %v1226_v48 = vpop.permute.xlu0 %1225 }
 0x8fe   :  { %v4859_v45 = vpop.eup %4858 }
 0x8ff   :  { %v1071_v46 = vmul.f32 %v4859_v45, %v4855_v28 }
 0x901   :  { %4426 = vmatmul.mubr.msk.f32.vlgmr.msra.gmra.mrb[10].mxu0 %vm215_vm2, %v1071_v46 }
 0x902   :  { %4434 = vmatpush3.xpose.msk.msra.mxu0 %vm215_vm2, %v1228_v34  ;;  %4435 = vmatprep.mubr.msk.f32.mxu0 %vm4951_vm1, %v4950_v36 }
 0x903   :  { %4443 = vmatprep.subr.mxu0 %v4950_v36 }
 0x905   :  { %4436 = vmatmul.mubr.msk.f32.vlgmr.msra.gmra.mrb[12].mxu0 %vm215_vm2, %v1226_v48 }
 0x906   :  { %4445 = vmatprep.mubr.msk.f32.mxu0 %vm4951_vm1, %v4950_v36 }
 0x99f   :  { %v1221_v49 = vpop.f32.mrb[12].mxu1 }
 0x9a0   :  { %v4432_v50 = vpop.f32.mrb[13].mxu1 }
 0x9a3   :  { %v1377_v51 = vpop.f32.mrb[14].mxu1 }
 0x9a4   :  { %v1382_v53 = vmul.f32 0.35355338, %v1377_v51  ;;  %v4442_v54 = vpop.f32.mrb[15].mxu1 }
 0x9a6   :  { %v1384_v55 = vsub.f32 %v1382_v53, %v5151_v58 }
 0x9a8   :  { %v1388_v56 = vsel %vm215_vm2, %v1384_v55, -inf }
 0x9a9   :  { %1389 = vmax.xlane.f32.xlu1 %v1388_v56 }
 0x9ba   :  { %1483 = vrot.lane.b32.xlu1 %v5118_v39, %s5783_s4 }
 0x9be   :  { %1561 = vrot.lane.b32.xlu1 %v5240_v11, %s5781_s29 }
 0x9c2   :  { %1563 = vrot.lane.b32.xlu1 %v5228_v4, %s5781_s29  ;;  %s5795_s29 = smov 24  }
 0x9c6   :  { %1571 = vrot.lane.b32.xlu1 %v1221_v49, %s5785_s30 }
 0x9d4   :  { %v1145_v57 = vpop.f32.mrb[10].mxu0 }
 0x9d5   :  { %v4427_v59 = vpop.f32.mrb[11].mxu0 }
 0x9d8   :  { %v1299_v60 = vpop.f32.mrb[12].mxu0 }
 0x9d9   :  { %v1381_v61 = vmul.f32 0.35355338, %v1299_v60  ;;  %v4437_v62 = vpop.f32.mrb[13].mxu0 }
 0x9db   :  { %v1383_v63 = vsub.f32 %v1381_v61, %v5148_v52 }
 0x9dd   :  { %v1385_v0 = vsel %vm215_vm2, %v1383_v63, -inf }
 0x9de   :  { %1386 = vmax.xlane.f32.xlu0 %v1385_v0 }
 0xa36   :  { %v1390_v39 = vpop.xlane.xlu1 %1389 }
 0xa37   :  { %v1392_v1 = vsub.f32 %v1384_v55, %v1390_v39 }
 0xa39   :  { %v1395_v2 = vmul.f32 1.442695, %v1392_v1  ;;  %v1730_v1 = vld [vmem:[%s5767_s10 + $0x8] sm:$0xff] }
 0xa3a   :  { %v1484_v3 = vpop.permute.xlu1 %1483 }
 0xa3b   :  { %4860 = vpow2.f32 %v1395_v2  ;;  %4449 = vmatpush3.msra.mxu1 %v1484_v3  ;;  %v1731_v3 = vld [vmem:[%s5767_s10 + $0x10] sm:$0xff] }
 0xa3e   :  { %v1562_v28 = vpop.permute.xlu1 %1561 }
 0xa3f   :  { %v1583_v34 = vsel %vm215_vm2, %v5189_v27, %v1562_v28  ;;  %v4122_v27 = vld [vmem:[%s5764_s7] ss:$0 sm:$0xff] }
 0xa42   :  { %v1564_v29 = vpop.permute.xlu1 %1563 }
 0xa43   :  { %v1584_v38 = vsel %vm215_vm2, %v5192_v30, %v1564_v29 }
 0xa45   :  { %v4861_v4 = vpop.eup %4860 }
 0xa46   :  { %v1400_v5 = vsel %vm215_vm2, %v4861_v4, 0.0  ;;  %v1572_v31 = vpop.permute.xlu1 %1571 }
 0xa47   :  { %1401 = vadd.xlane.f32.xlu0 %v1400_v5  ;;  %v1587_v43 = vsel %vm1585_vm3, %v1584_v38, %v1572_v31  ;;  %v1839_v38 = vld [vmem:[%s5769_s12 + $0x40] sm:$0xff] }
 0xa6b   :  { %v1387_v6 = vpop.xlane.xlu0 %1386 }
 0xa6c   :  { %v1391_v7 = vsub.f32 %v1383_v63, %v1387_v6  ;;  %v1831_v6 = vld [vmem:[%s5769_s12] sm:$0xff] }
 0xa6e   :  { %v1393_v8 = vmul.f32 1.442695, %v1391_v7  ;;  %v1832_v7 = vld [vmem:[%s5769_s12 + $0x8] sm:$0xff] }
 0xa70   :  { %4862 = vpow2.f32 %v1393_v8  ;;  %v1833_v8 = vld [vmem:[%s5769_s12 + $0x10] sm:$0xff] }
 0xa7a   :  { %v4863_v9 = vpop.eup %4862 }
 0xa7b   :  { %v1397_v10 = vsel %vm215_vm2, %v4863_v9, 0.0 }
 0xa7c   :  { %1398 = vadd.xlane.f32.xlu0 %v1397_v10  ;;  %v1834_v10 = vld [vmem:[%s5769_s12 + $0x18] sm:$0xff] }
 0xa92   :  { %1407 = vrot.lane.b32.xlu0 %v5120_v41, %s5783_s4  ;;  %v1591_v41 = vld [vmem:[%s5763_s6] sm:$0xff]  ;;  %s5817_s4 = smov 40  }
 0xa93   :  { %v4695_v20 = vpack.c.bf16 %v1592_v18, %v1591_v41 }
 0xa96   :  { %1569 = vrot.lane.b32.xlu0 %v1145_v57, %s5785_s30  ;;  %s5818_s30 = smov 8  }
 0xad4   :  { %v1402_v11 = vpop.xlane.xlu0 %1401 }
 0xad5   :  { %4864 = vrcp.f32 %v1402_v11  ;;  %v4715_v11 = vpack.c.bf16 %v1834_v10, %v1833_v8 }
 0xadf   :  { %v4865_v12 = vpop.eup %4864 }
 0xae0   :  { %v1406_v13 = vmul.f32 %v4865_v12, %v4861_v4  ;;  %v1732_v4 = vld [vmem:[%s5767_s10 + $0x18] sm:$0xff]  ;;  %v1835_v12 = vld [vmem:[%s5769_s12 + $0x20] sm:$0xff] }
 0xae1   :  { %v4707_v5 = vpack.c.bf16 %v1732_v4, %v1731_v3 }
 0xae2   :  { %4451 = vmatmul.mubr.msk.f32.vlgmr.msra.gmra.mrb[16].mxu1 %vm215_vm2, %v1406_v13  ;;  %v1836_v13 = vld [vmem:[%s5769_s12 + $0x28] sm:$0xff] }
 0xb09   :  { %v1399_v14 = vpop.xlane.xlu0 %1398 }
 0xb0a   :  { %4866 = vrcp.f32 %v1399_v14  ;;  %v4719_v14 = vpack.c.bf16 %v1836_v13, %v1835_v12 }
 0xb0d   :  { %v1408_v15 = vpop.permute.xlu0 %1407 }
 0xb0e   :  { %4444 = vmatpush3.msra.mxu0 %v1408_v15 }
 0xb0f   :  { %4696 = vmatprep.subr.bf16.mxu0 %v4695_v20 }
 0xb11   :  { %v1570_v32 = vpop.permute.xlu0 %1569 }
 0xb12   :  { %v1586_v40 = vsel %vm1585_vm3, %v1583_v34, %v1570_v32  ;;  %v1837_v32 = vld [vmem:[%s5769_s12 + $0x30] sm:$0xff]  ;;  %v1838_v34 = vld [vmem:[%s5769_s12 + $0x38] sm:$0xff] }
 0xb14   :  { %v4867_v16 = vpop.eup %4866 }
 0xb15   :  { %v1405_v17 = vmul.f32 %v4867_v16, %v4863_v9  ;;  %v4711_v9 = vpack.c.bf16 %v1832_v7, %v1831_v6 }
 0xb17   :  { %4446 = vmatmul.mubr.msk.f32.vlgmr.msra.gmra.mrb[14].mxu0 %vm215_vm2, %v1405_v17 }
 0xb18   :  { %4698 = vmatpush3.bf16.msra.mxu0 %v4695_v20 }
 0xb19   :  { %4700 = vmatprep.subr.bf16.mxu0 %v4699_v22 }
 0xb1c   :  { %4702 = vmatpush3.bf16.msra.mxu0 %v4699_v22 }
 0xb1d   :  { %4712 = vmatprep.subr.bf16.mxu0 %v4711_v9 }
 0xbb5   :  { %v1555_v23 = vpop.f32.mrb[16].mxu1 }
 0xbb6   :  { %1579 = vrot.lane.b32.xlu1 %v1555_v23, %s5795_s29  ;;  %v4452_v24 = vpop.f32.mrb[17].mxu1  ;;  %v4126_v23 = vld [vmem:[%s5766_s9] ss:$0 sm:$0xff] }
 0xbea   :  { %v1479_v25 = vpop.f32.mrb[14].mxu0 }
 0xbeb   :  { %1577 = vrot.lane.b32.xlu0 %v1479_v25, %s5795_s29  ;;  %v4447_v26 = vpop.f32.mrb[15].mxu0 }
 0xc28   :  { %v1580_v37 = vpop.permute.xlu1 %1579 }
 0xc29   :  { %v1590_v46 = vsel %vm1588_vm4, %v1587_v43, %v1580_v37  ;;  %v4723_v37 = vpack.c.bf16 %v1838_v34, %v1837_v32  ;;  %v1841_v43 = vld [vmem:[%s5769_s12 + $0x50] sm:$0xff] }
 0xc5d   :  { %v1578_v42 = vpop.permute.xlu0 %1577 }
 0xc5e   :  { %v1589_v45 = vsel %vm1588_vm4, %v1586_v40, %v1578_v42  ;;  %v1840_v40 = vld [vmem:[%s5769_s12 + $0x48] sm:$0xff] }
 0xc5f   :  { %4461 = vmatprep.mubr.msk.f32.mxu0 %vm76_vm0, %v1589_v45  ;;  %v4727_v42 = vpack.c.bf16 %v1840_v40, %v1839_v38  ;;  %v1842_v45 = vld [vmem:[%s5769_s12 + $0x58] sm:$0xff]  ;;  %v4131_v38 = vld [vmem:[%s5771_s14] ss:$0 sm:$0xff] }
 0xc60   :  { %4462 = vmatmul.mubr.msk.f32.vlgmr.msra.gmra.mrb[16].mxu0 %vm76_vm0, %v1590_v46  ;;  %v4731_v46 = vpack.c.bf16 %v1842_v45, %v1841_v43  ;;  %v4132_v45 = vld [vmem:[%s5772_s15] ss:$0 sm:$0xff] }
 0xc61   :  { %4714 = vmatpush3.bf16.msra.mxu0 %v4711_v9 }
 0xc62   :  { %4716 = vmatprep.subr.bf16.mxu0 %v4715_v11 }
 0xc65   :  { %4718 = vmatpush3.bf16.msra.mxu0 %v4715_v11 }
 0xc66   :  { %4720 = vmatprep.subr.bf16.mxu0 %v4719_v14 }
 0xc69   :  { %4722 = vmatpush3.bf16.msra.mxu0 %v4719_v14 }
 0xc6a   :  { %4724 = vmatprep.subr.bf16.mxu0 %v4723_v37 }
 0xc6d   :  { %4726 = vmatpush3.bf16.msra.mxu0 %v4723_v37 }
 0xc6e   :  { %4728 = vmatprep.subr.bf16.mxu0 %v4727_v42 }
 0xc71   :  { %4730 = vmatpush3.bf16.msra.mxu0 %v4727_v42 }
 0xc72   :  { %4732 = vmatprep.subr.bf16.mxu0 %v4731_v46 }
 0xc75   :  { %4734 = vmatpush3.bf16.msra.mxu0 %v4731_v46 }
 0xd33   :  { %v4463_v48 = vpop.f32.mrb[16].mxu0 }
 0xd34   :  { %v1680_v49 = vadd.f32 %v4463_v48, %v4122_v27  ;;  %v1674_v30 = vpop.f32.mrb[17].mxu0  ;;  %v1844_v48 = vld [vmem:[%s5769_s12 + $0x68] sm:$0xff] }
 0xd35   :  { %v1675_v50 = vadd.f32 %v4122_v27, %v1674_v30  ;;  %v1843_v27 = vld [vmem:[%s5769_s12 + $0x60] sm:$0xff]  ;;  %v1845_v30 = vld [vmem:[%s5769_s12 + $0x70] sm:$0xff] }
 0xd36   :  { %v1684_v51 = vadd.f32 %v1680_v49, %v5105_v35  ;;  %v4735_v49 = vpack.c.bf16 %v1844_v48, %v1843_v27 }
 0xd37   :  { %v1683_v53 = vadd.f32 %v1675_v50, %v5101_v33  ;;  %v1729_v33 = vld [vmem:[%s5767_s10] sm:$0xff]  ;;  %v1846_v50 = vld [vmem:[%s5769_s12 + $0x78] sm:$0xff] }
 0xd38   :  { %v1690_v54 = vsel %vm76_vm0, %v1684_v51, 0.0  ;;  %v4703_v2 = vpack.c.bf16 %v1730_v1, %v1729_v33  ;;  %4736 = vmatprep.subr.bf16.mxu0 %v4735_v49 }
 0xd39   :  { %1691 = vadd.xlane.f32.xlu1 %v1690_v54  ;;  %v1687_v55 = vsel %vm76_vm0, %v1683_v53, 0.0  ;;  %4738 = vmatpush3.bf16.msra.mxu0 %v4735_v49 }
 0xd3a   :  { %1688 = vadd.xlane.f32.xlu0 %v1687_v55  ;;  %4704 = vmatprep.subr.bf16.mxu1 %v4703_v2 }
 0xd3b   :  { %4706 = vmatpush3.bf16.msra.mxu1 %v4703_v2  ;;  %v4130_v2 = vld [vmem:[%s5770_s13] ss:$0 sm:$0xff] }
 0xd3c   :  { %4708 = vmatprep.subr.bf16.mxu1 %v4707_v5 }
 0xd3f   :  { %4710 = vmatpush3.bf16.msra.mxu1 %v4707_v5 }
 0xdc6   :  { %v1692_v56 = vpop.xlane.xlu1 %1691 }
 0xdc7   :  { %v1694_v57 = vmul.f32 0.03125, %v1692_v56  ;;  %v1689_v59 = vpop.xlane.xlu0 %1688 }
 0xdc8   :  { %v1693_v60 = vmul.f32 0.03125, %v1689_v59 }
 0xdc9   :  { %v1696_v61 = vsub.f32 %v1684_v51, %v1694_v57  ;;  %v4739_v51 = vpack.c.bf16 %v1846_v50, %v1845_v30  ;;  %v4138_v30 = vld [vmem:[%s5762_s5 + $0x1] ss:$0 sm:$0xff]  ;;  %s5811_s5 = smov 56  }
 0xdca   :  { %v1695_v62 = vsub.f32 %v1683_v53, %v1693_v60  ;;  %v4127_v53 = vld [vmem:[%s5768_s11] ss:$0 sm:$0xff] }
 0xdcb   :  { %v1698_v39 = vmul.f32 %v1696_v61, %v1696_v61  ;;  %4740 = vmatprep.subr.bf16.mxu0 %v4739_v51 }
 0xdcc   :  { %v1697_v63 = vmul.f32 %v1695_v62, %v1695_v62  ;;  %4742 = vmatpush3.bf16.msra.mxu0 %v4739_v51 }
 0xdcd   :  { %v1702_v35 = vsel %vm76_vm0, %v1698_v39, 0.0  ;;  %4551 = vmatprep.subr.mxu0 %v4950_v36 }
 0xdce   :  { %v1699_v0 = vsel %vm76_vm0, %v1697_v63, 0.0 }
 0xdcf   :  { %1700 = vadd.xlane.f32.xlu0 %v1699_v0 }
 0xdd3   :  { %1703 = vadd.xlane.f32.xlu0 %v1702_v35 }
 0xe5c   :  { %v1701_v15 = vpop.xlane.xlu0 %1700 }
 0xe5d   :  { %v1705_v16 = vmul.f32 0.03125, %v1701_v15 }
 0xe5f   :  { %v1707_v17 = vadd.f32 1e-12, %v1705_v16 }
 0xe60   :  { %v1704_v41 = vpop.xlane.xlu0 %1703 }
 0xe61   :  { %4868 = vrsqrt.f32 %v1707_v17  ;;  %v1706_v18 = vmul.f32 0.03125, %v1704_v41 }
 0xe63   :  { %v1708_v19 = vadd.f32 1e-12, %v1706_v18 }
 0xe65   :  { %4870 = vrsqrt.f32 %v1708_v19 }
 0xe6b   :  { %v4869_v20 = vpop.eup %4868 }
 0xe6c   :  { %v1711_v22 = vmul.f32 %v4869_v20, %v1695_v62  ;;  %v4133_v20 = vld [vmem:[%s5807_s26 + $0x20] sm:$0xff] }
 0xe6e   :  { %v1719_v24 = vmul.f32 %v4125_v21, %v1711_v22 }
 0xe6f   :  { %v4871_v25 = vpop.eup %4870 }
 0xe70   :  { %v1712_v26 = vmul.f32 %v4871_v25, %v1696_v61  ;;  %v1727_v28 = vadd.f32 %v4126_v23, %v1719_v24  ;;  %v4136_v24 = vld [vmem:[%s5807_s26 + $0x38] sm:$0xff] }
 0xe72   :  { %v1720_v29 = vmul.f32 %v4125_v21, %v1712_v26  ;;  %4472 = vmatprep.mubr.msk.f32.mxu1 %vm76_vm0, %v1727_v28  ;;  %v4134_v21 = vld [vmem:[%s5807_s26 + $0x28] sm:$0xff] }
 0xe73   :  { %v4743_v22 = vpack.c.bf16 %v4134_v21, %v4133_v20 }
 0xe74   :  { %v1728_v31 = vadd.f32 %v4126_v23, %v1720_v29  ;;  %v4135_v23 = vld [vmem:[%s5807_s26 + $0x30] sm:$0xff] }
 0xe75   :  { %4744 = vmatprep.subr.bf16.mxu1 %v4743_v22  ;;  %v4747_v25 = vpack.c.bf16 %v4136_v24, %v4135_v23 }
 0xe76   :  { %4473 = vmatmul.mubr.msk.f32.vlgmr.msra.gmra.mrb[18].mxu1 %vm76_vm0, %v1728_v31 }
 0xe77   :  { %4746 = vmatpush3.bf16.msra.mxu1 %v4743_v22 }
 0xe78   :  { %4748 = vmatprep.subr.bf16.mxu1 %v4747_v25 }
 0xe7b   :  { %4750 = vmatpush3.bf16.msra.mxu1 %v4747_v25 }
 0xe7c   :  { %4521 = vmatprep.subr.mxu1 %v4950_v36 }
 0xf49   :  { %v4474_v54 = vpop.f32.mrb[18].mxu1 }
 0xf4a   :  { %v1818_v55 = vadd.f32 %v4474_v54, %v4127_v53  ;;  %v1812_v56 = vpop.f32.mrb[19].mxu1 }
 0xf4b   :  { %v1813_v57 = vadd.f32 %v4127_v53, %v1812_v56 }
 0xf4c   :  { %v1824_v59 = vmul.f32 0.70710677, %v1818_v55  ;;  %v1822_v35 = vmul.f32 0.5, %v1818_v55 }
 0xf4d   :  { %v1823_v60 = vmul.f32 0.70710677, %v1813_v57  ;;  %v1821_v0 = vmul.f32 0.5, %v1813_v57 }
 0xf4e   :  { %4872 = verf.f32 %v1824_v59 }
 0xf4f   :  { %4874 = verf.f32 %v1823_v60 }
 0xf58   :  { %v4873_v61 = vpop.eup %4872 }
 0xf59   :  { %v4875_v62 = vpop.eup %4874  ;;  %v1828_v63 = vadd.f32 1.0, %v4873_v61 }
 0xf5a   :  { %v1827_v39 = vadd.f32 1.0, %v4875_v62 }
 0xf5b   :  { %v1830_v1 = vmul.f32 %v1828_v63, %v1822_v35 }
 0xf5c   :  { %v1829_v33 = vmul.f32 %v1827_v39, %v1821_v0 }
 0xf5e   :  { %4507 = vmatprep.mubr.f32.mxu0 %v1829_v33 }
 0xf5f   :  { %4508 = vmatmul.mubr.f32.vlgmr.msra.gmra.mrb[18].mxu0 %v1830_v1 }
 0xf60   :  { %4553 = vmatprep.mubr.msk.f32.mxu0 %vm4951_vm1, %v4950_v36 }
0x1032   :  { %v4509_v3 = vpop.f32.mrb[18].mxu0 }
0x1033   :  { %v1926_v4 = vadd.f32 %v4509_v3, %v4130_v2  ;;  %v1920_v5 = vpop.f32.mrb[19].mxu0 }
0x1034   :  { %v1921_v6 = vadd.f32 %v4130_v2, %v1920_v5 }
0x1035   :  { %v1930_v7 = vadd.f32 %v1926_v4, %v1728_v31 }
0x1036   :  { %v1929_v8 = vadd.f32 %v1921_v6, %v1727_v28 }
0x1037   :  { %v1936_v9 = vsel %vm76_vm0, %v1930_v7, 0.0 }
0x1038   :  { %1937 = vadd.xlane.f32.xlu1 %v1936_v9  ;;  %v1933_v10 = vsel %vm76_vm0, %v1929_v8, 0.0 }
0x1039   :  { %1934 = vadd.xlane.f32.xlu0 %v1933_v10 }
0x10c5   :  { %v1938_v11 = vpop.xlane.xlu1 %1937 }
0x10c6   :  { %v1940_v12 = vmul.f32 0.03125, %v1938_v11  ;;  %v1935_v13 = vpop.xlane.xlu0 %1934 }
0x10c7   :  { %v1939_v14 = vmul.f32 0.03125, %v1935_v13 }
0x10c8   :  { %v1942_v15 = vsub.f32 %v1930_v7, %v1940_v12 }
0x10c9   :  { %v1941_v16 = vsub.f32 %v1929_v8, %v1939_v14 }
0x10ca   :  { %v1944_v17 = vmul.f32 %v1942_v15, %v1942_v15 }
0x10cb   :  { %v1943_v41 = vmul.f32 %v1941_v16, %v1941_v16 }
0x10cc   :  { %v1948_v18 = vsel %vm76_vm0, %v1944_v17, 0.0 }
0x10cd   :  { %1949 = vadd.xlane.f32.xlu1 %v1948_v18  ;;  %v1945_v19 = vsel %vm76_vm0, %v1943_v41, 0.0 }
0x10ce   :  { %1946 = vadd.xlane.f32.xlu0 %v1945_v19 }
0x115a   :  { %v1950_v26 = vpop.xlane.xlu1 %1949 }
0x115b   :  { %v1952_v28 = vmul.f32 0.03125, %v1950_v26  ;;  %v1947_v29 = vpop.xlane.xlu0 %1946 }
0x115c   :  { %v1951_v31 = vmul.f32 0.03125, %v1947_v29 }
0x115d   :  { %v1954_v32 = vadd.f32 1e-12, %v1952_v28 }
0x115e   :  { %v1953_v34 = vadd.f32 1e-12, %v1951_v31 }
0x115f   :  { %4876 = vrsqrt.f32 %v1954_v32 }
0x1160   :  { %4878 = vrsqrt.f32 %v1953_v34 }
0x1169   :  { %v4877_v37 = vpop.eup %4876 }
0x116a   :  { %v4879_v40 = vpop.eup %4878  ;;  %v1958_v42 = vmul.f32 %v4877_v37, %v1942_v15 }
0x116b   :  { %v1957_v43 = vmul.f32 %v4879_v40, %v1941_v16 }
0x116c   :  { %v1966_v46 = vmul.f32 %v4131_v38, %v1958_v42 }
0x116d   :  { %v1965_v27 = vmul.f32 %v4131_v38, %v1957_v43 }
0x116e   :  { %v5421_v49 = vadd.f32 %v4132_v45, %v1966_v46 }
0x116f   :  { %v5419_v48 = vadd.f32 %v4132_v45, %v1965_v27 }
0x1171   :  { %4518 = vmatprep.mubr.msk.f32.mxu1 %vm76_vm0, %v5419_v48 }
0x1172   :  { %4519 = vmatmul.mubr.msk.f32.vlgmr.msra.gmra.mrb[20].mxu1 %vm76_vm0, %v5421_v49 }
0x1173   :  { %4523 = vmatprep.mubr.msk.f32.mxu1 %vm4951_vm1, %v4950_v36 }
0x1245   :  { %v4520_v50 = vpop.f32.mrb[20].mxu1 }
0x1246   :  { %v5432_v51 = vadd.f32 %v4520_v50, %v4138_v30  ;;  %v2060_v53 = vpop.f32.mrb[21].mxu1 }
0x1247   :  { %v5434_v54 = vadd.f32 %v4138_v30, %v2060_v53 }
0x1248   :  { %2147 = vrot.lane.b32.xlu1 %v5432_v51, %s4952_s27 }
0x1249   :  { %2070 = vrot.lane.b32.xlu0 %v5434_v54, %s4952_s27  ;;  %s5812_s27 = smov 80  }
0x12ba   :  { %v2148_v56 = vpop.permute.xlu1 %2147 }
0x12bb   :  { %v2071_v55 = vpop.permute.xlu0 %2070 }
0x12bc   :  { %4522 = vmatpush3.xpose.msk.msra.mxu1 %vm215_vm2, %v2071_v55 }
0x12bd   :  { %4526 = vmatprep.subr.mxu1 %v4950_v36 }
0x12bf   :  { %4524 = vmatmul.mubr.msk.f32.vlgmr.msra.gmra.mrb[22].mxu1 %vm215_vm2, %v5434_v54 }
0x12c0   :  { %4527 = vmatpush3.xpose.msk.msra.mxu1 %vm215_vm2, %v2148_v56  ;;  %4528 = vmatprep.mubr.msk.f32.mxu1 %vm4951_vm1, %v4950_v36 }
0x12c1   :  { %4531 = vmatprep.subr.mxu1 %v4950_v36 }
0x12c3   :  { %4529 = vmatmul.mubr.msk.f32.vlgmr.msra.gmra.mrb[24].mxu1 %vm215_vm2, %v5432_v51 }
0x12c4   :  { %4533 = vmatprep.mubr.msk.f32.mxu1 %vm4951_vm1, %v4950_v36 }
0x1392   :  { %v2142_v57 = vpop.f32.mrb[22].mxu1 }
0x1393   :  { %v2223_v59 = vmul.f32 0.35355338, %v2142_v57  ;;  %v4525_v60 = vpop.f32.mrb[23].mxu1 }
0x1395   :  { %v2225_v61 = vsub.f32 %v2223_v59, %v5148_v52 }
0x1396   :  { %v2219_v62 = vpop.f32.mrb[24].mxu1 }
0x1397   :  { %v2224_v63 = vmul.f32 0.35355338, %v2219_v62  ;;  %v4530_v0 = vpop.f32.mrb[25].mxu1  ;;  %v2227_v39 = vsel %vm215_vm2, %v2225_v61, -inf }
0x1398   :  { %2228 = vmax.xlane.f32.xlu1 %v2227_v39 }
0x1399   :  { %v2226_v35 = vsub.f32 %v2224_v63, %v5151_v58 }
0x139b   :  { %v2230_v33 = vsel %vm215_vm2, %v2226_v35, -inf }
0x139c   :  { %2231 = vmax.xlane.f32.xlu0 %v2230_v33 }
0x13a9   :  { %2325 = vrot.lane.b32.xlu1 %v5432_v51, %s4953_s21 }
0x13ad   :  { %2403 = vrot.lane.b32.xlu1 %v5434_v54, %s4954_s1 }
0x13b1   :  { %2401 = vrot.lane.b32.xlu1 %v5434_v54, %s4955_s22 }
0x1425   :  { %v2229_v1 = vpop.xlane.xlu1 %2228 }
0x1426   :  { %v2233_v2 = vsub.f32 %v2225_v61, %v2229_v1 }
0x1428   :  { %v2235_v3 = vmul.f32 1.442695, %v2233_v2 }
0x1429   :  { %v2232_v4 = vpop.xlane.xlu0 %2231  ;;  %v2326_v11 = vpop.permute.xlu1 %2325 }
0x142a   :  { %4880 = vpow2.f32 %v2235_v3  ;;  %v2234_v5 = vsub.f32 %v2226_v35, %v2232_v4 }
0x142c   :  { %v2237_v6 = vmul.f32 1.442695, %v2234_v5 }
0x142d   :  { %v2404_v12 = vpop.permute.xlu1 %2403 }
0x142e   :  { %4882 = vpow2.f32 %v2237_v6 }
0x1431   :  { %v2402_v13 = vpop.permute.xlu1 %2401 }
0x1434   :  { %v4881_v7 = vpop.eup %4880 }
0x1435   :  { %v2239_v8 = vsel %vm215_vm2, %v4881_v7, 0.0 }
0x1436   :  { %2240 = vadd.xlane.f32.xlu0 %v2239_v8 }
0x1438   :  { %v4883_v9 = vpop.eup %4882 }
0x1439   :  { %v2242_v10 = vsel %vm215_vm2, %v4883_v9, 0.0 }
0x143a   :  { %2243 = vadd.xlane.f32.xlu1 %v2242_v10 }
0x144b   :  { %2479 = vrot.lane.b32.xlu1 %v5432_v51, %s4955_s22  ;;  %s5815_s22 = smov 72  }
0x144c   :  { %2249 = vrot.lane.b32.xlu0 %v5434_v54, %s4953_s21  ;;  %s5813_s21 = smov 112  }
0x1450   :  { %2481 = vrot.lane.b32.xlu0 %v5432_v51, %s4954_s1  ;;  %s5814_s1 = smov 48  }
0x14c3   :  { %v2241_v14 = vpop.xlane.xlu0 %2240 }
0x14c4   :  { %4884 = vrcp.f32 %v2241_v14 }
0x14c7   :  { %v2244_v15 = vpop.xlane.xlu1 %2243  ;;  %v2250_v16 = vpop.permute.xlu0 %2249 }
0x14c8   :  { %4886 = vrcp.f32 %v2244_v15  ;;  %4532 = vmatpush3.msra.mxu1 %v2250_v16 }
0x14c9   :  { %4536 = vmatprep.subr.mxu1 %v4950_v36 }
0x14cb   :  { %v2482_v20 = vpop.permute.xlu0 %2481  ;;  %v2480_v21 = vpop.permute.xlu1 %2479 }
0x14ce   :  { %v4885_v17 = vpop.eup %4884 }
0x14cf   :  { %v2247_v41 = vmul.f32 %v4885_v17, %v4881_v7 }
0x14d1   :  { %4534 = vmatmul.mubr.msk.f32.vlgmr.msra.gmra.mrb[26].mxu1 %vm215_vm2, %v2247_v41 }
0x14d2   :  { %v4887_v18 = vpop.eup %4886  ;;  %4537 = vmatpush3.msra.mxu1 %v2326_v11  ;;  %4538 = vmatprep.mubr.msk.f32.mxu1 %vm4951_vm1, %v4950_v36 }
0x14d3   :  { %v2248_v19 = vmul.f32 %v4887_v18, %v4883_v9  ;;  %4541 = vmatprep.subr.mxu1 %v4950_v36 }
0x14d5   :  { %4539 = vmatmul.mubr.msk.f32.vlgmr.msra.gmra.mrb[28].mxu1 %vm215_vm2, %v2248_v19 }
0x14d6   :  { %4543 = vmatprep.mubr.msk.f32.mxu1 %vm4951_vm1, %v4950_v36 }
0x14d9   :  { %4542 = vmatpush3.xpose.msk.msra.mxu1 %vm215_vm2, %v2404_v12 }
0x14da   :  { %4546 = vmatprep.subr.mxu1 %v4950_v36 }
0x14dc   :  { %4544 = vmatmul.mubr.msk.f32.vlgmr.msra.gmra.mrb[30].mxu1 %vm215_vm2, %v2402_v13 }
0x14dd   :  { %4547 = vmatpush3.xpose.msk.msra.mxu1 %vm215_vm2, %v2482_v20  ;;  %4548 = vmatprep.mubr.msk.f32.mxu1 %vm4951_vm1, %v4950_v36 }
0x14de   :  { %4556 = vmatprep.subr.mxu1 %v4950_v36 }
0x14e0   :  { %4549 = vmatmul.mubr.msk.f32.vlgmr.msra.gmra.mrb[32].mxu1 %vm215_vm2, %v2480_v21 }
0x14e1   :  { %4558 = vmatprep.mubr.msk.f32.mxu1 %vm4951_vm1, %v4950_v36 }
0x15a4   :  { %v5488_v22 = vpop.f32.mrb[26].mxu1 }
0x15a5   :  { %v4535_v23 = vpop.f32.mrb[27].mxu1 }
0x15a8   :  { %v5490_v24 = vpop.f32.mrb[28].mxu1 }
0x15a9   :  { %v4540_v25 = vpop.f32.mrb[29].mxu1 }
0x15af   :  { %v2475_v26 = vpop.f32.mrb[30].mxu1 }
0x15b0   :  { %v2557_v28 = vmul.f32 0.35355338, %v2475_v26  ;;  %v4545_v29 = vpop.f32.mrb[31].mxu1 }
0x15b2   :  { %v2559_v31 = vsub.f32 %v2557_v28, %v5148_v52 }
0x15b3   :  { %v2553_v32 = vpop.f32.mrb[32].mxu1 }
0x15b4   :  { %v2558_v34 = vmul.f32 0.35355338, %v2553_v32  ;;  %v4550_v37 = vpop.f32.mrb[33].mxu1  ;;  %v2561_v38 = vsel %vm215_vm2, %v2559_v31, -inf }
0x15b5   :  { %2562 = vmax.xlane.f32.xlu0 %v2561_v38 }
0x15b6   :  { %v2560_v40 = vsub.f32 %v2558_v34, %v5151_v58 }
0x15b8   :  { %v2564_v42 = vsel %vm215_vm2, %v2560_v40, -inf }
0x15b9   :  { %2565 = vmax.xlane.f32.xlu1 %v2564_v42 }
0x15ca   :  { %2659 = vrot.lane.b32.xlu1 %v5432_v51, %s5811_s5 }
0x15cb   :  { %2583 = vrot.lane.b32.xlu0 %v5434_v54, %s5811_s5 }
0x15ce   :  { %2737 = vrot.lane.b32.xlu1 %v5434_v54, %s5812_s27 }
0x15d2   :  { %2815 = vrot.lane.b32.xlu1 %v5432_v51, %s5812_s27  ;;  %s5820_s27 = smov 24  }
0x15d6   :  { %2813 = vrot.lane.b32.xlu1 %v5432_v51, %s5813_s21 }
0x1642   :  { %v2563_v43 = vpop.xlane.xlu0 %2562 }
0x1643   :  { %v2567_v45 = vsub.f32 %v2559_v31, %v2563_v43 }
0x1645   :  { %v2569_v46 = vmul.f32 1.442695, %v2567_v45 }
0x1646   :  { %v2584_v27 = vpop.permute.xlu0 %2583  ;;  %v2566_v30 = vpop.xlane.xlu1 %2565 }
0x1647   :  { %4888 = vpow2.f32 %v2569_v46  ;;  %v2568_v50 = vsub.f32 %v2560_v40, %v2566_v30  ;;  %4552 = vmatpush3.msra.mxu0 %v2584_v27 }
0x1648   :  { %4561 = vmatprep.subr.mxu0 %v4950_v36 }
0x1649   :  { %v2571_v53 = vmul.f32 1.442695, %v2568_v50 }
0x164a   :  { %v2660_v55 = vpop.permute.xlu1 %2659 }
0x164b   :  { %4890 = vpow2.f32 %v2571_v53  ;;  %4557 = vmatpush3.msra.mxu1 %v2660_v55 }
0x164c   :  { %4566 = vmatprep.subr.mxu1 %v4950_v36 }
0x164e   :  { %v2738_v63 = vpop.permute.xlu1 %2737 }
0x1651   :  { %v4889_v56 = vpop.eup %4888 }
0x1652   :  { %v2573_v57 = vsel %vm215_vm2, %v4889_v56, 0.0  ;;  %v2816_v33 = vpop.permute.xlu1 %2815 }
0x1653   :  { %2574 = vadd.xlane.f32.xlu0 %v2573_v57 }
0x1655   :  { %v4891_v59 = vpop.eup %4890 }
0x1656   :  { %v2576_v60 = vsel %vm215_vm2, %v4891_v59, 0.0  ;;  %v2814_v3 = vpop.permute.xlu1 %2813 }
0x1657   :  { %2577 = vadd.xlane.f32.xlu0 %v2576_v60 }
0x166d   :  { %2735 = vrot.lane.b32.xlu0 %v5434_v54, %s5813_s21 }
0x16e0   :  { %v2575_v61 = vpop.xlane.xlu0 %2574 }
0x16e1   :  { %4892 = vrcp.f32 %v2575_v61 }
0x16e4   :  { %v2578_v62 = vpop.xlane.xlu0 %2577 }
0x16e5   :  { %4894 = vrcp.f32 %v2578_v62 }
0x16e8   :  { %v2736_v2 = vpop.permute.xlu0 %2735 }
0x16eb   :  { %v4893_v0 = vpop.eup %4892 }
0x16ec   :  { %v2581_v39 = vmul.f32 %v4893_v0, %v4889_v56 }
0x16ee   :  { %4554 = vmatmul.mubr.msk.f32.vlgmr.msra.gmra.mrb[20].mxu0 %vm215_vm2, %v2581_v39 }
0x16ef   :  { %v4895_v35 = vpop.eup %4894  ;;  %4562 = vmatpush3.xpose.msk.msra.mxu0 %vm215_vm2, %v2738_v63  ;;  %4563 = vmatprep.mubr.msk.f32.mxu0 %vm4951_vm1, %v4950_v36 }
0x16f0   :  { %v2582_v1 = vmul.f32 %v4895_v35, %v4891_v59  ;;  %4571 = vmatprep.subr.mxu0 %v4950_v36 }
0x16f2   :  { %4559 = vmatmul.mubr.msk.f32.vlgmr.msra.gmra.mrb[34].mxu1 %vm215_vm2, %v2582_v1  ;;  %4564 = vmatmul.mubr.msk.f32.vlgmr.msra.gmra.mrb[22].mxu0 %vm215_vm2, %v2736_v2 }
0x16f3   :  { %4567 = vmatpush3.xpose.msk.msra.mxu1 %vm215_vm2, %v2816_v33  ;;  %4568 = vmatprep.mubr.msk.f32.mxu1 %vm4951_vm1, %v4950_v36 }
0x16f4   :  { %4576 = vmatprep.subr.mxu1 %v4950_v36  ;;  %4573 = vmatprep.mubr.msk.f32.mxu0 %vm4951_vm1, %v4950_v36 }
0x16f6   :  { %4569 = vmatmul.mubr.msk.f32.vlgmr.msra.gmra.mrb[36].mxu1 %vm215_vm2, %v2814_v3 }
0x16f7   :  { %4578 = vmatprep.mubr.msk.f32.mxu1 %vm4951_vm1, %v4950_v36 }
0x17c1   :  { %v5528_v4 = vpop.f32.mrb[20].mxu0 }
0x17c2   :  { %v4555_v5 = vpop.f32.mrb[21].mxu0 }
0x17c5   :  { %v5530_v6 = vpop.f32.mrb[34].mxu1  ;;  %v2809_v7 = vpop.f32.mrb[22].mxu0 }
0x17c6   :  { %v2891_v8 = vmul.f32 0.35355338, %v2809_v7  ;;  %v4560_v9 = vpop.f32.mrb[35].mxu1  ;;  %v4565_v10 = vpop.f32.mrb[23].mxu0 }
0x17c8   :  { %v2893_v11 = vsub.f32 %v2891_v8, %v5148_v52 }
0x17c9   :  { %v2887_v12 = vpop.f32.mrb[36].mxu1 }
0x17ca   :  { %v2892_v13 = vmul.f32 0.35355338, %v2887_v12  ;;  %v4570_v14 = vpop.f32.mrb[37].mxu1  ;;  %v2895_v15 = vsel %vm215_vm2, %v2893_v11, -inf }
0x17cb   :  { %2896 = vmax.xlane.f32.xlu0 %v2895_v15 }
0x17cc   :  { %v2894_v16 = vsub.f32 %v2892_v13, %v5151_v58 }
0x17ce   :  { %v2898_v17 = vsel %vm215_vm2, %v2894_v16, -inf }
0x17cf   :  { %2899 = vmax.xlane.f32.xlu1 %v2898_v17 }
0x17e0   :  { %2993 = vrot.lane.b32.xlu1 %v5432_v51, %s5814_s1 }
0x17e1   :  { %2917 = vrot.lane.b32.xlu0 %v5434_v54, %s5814_s1 }
0x17e4   :  { %3071 = vrot.lane.b32.xlu1 %v5434_v54, %s5815_s22 }
0x17e8   :  { %3149 = vrot.lane.b32.xlu1 %v5432_v51, %s5815_s22 }
0x17ec   :  { %3147 = vrot.lane.b32.xlu1 %v5432_v51, %s5816_s24 }
0x1858   :  { %v2897_v41 = vpop.xlane.xlu0 %2896 }
0x1859   :  { %v2901_v18 = vsub.f32 %v2893_v11, %v2897_v41  ;;  %v4167_v41 = vld [vmem:[%s5763_s6 + $0x30] sm:$0xff] }
0x185b   :  { %v2903_v19 = vmul.f32 1.442695, %v2901_v18  ;;  %v4168_v18 = vld [vmem:[%s5763_s6 + $0x38] sm:$0xff] }
0x185c   :  { %v2918_v20 = vpop.permute.xlu0 %2917  ;;  %v2900_v21 = vpop.xlane.xlu1 %2899 }
0x185d   :  { %4896 = vpow2.f32 %v2903_v19  ;;  %v2902_v23 = vsub.f32 %v2894_v16, %v2900_v21  ;;  %4572 = vmatpush3.msra.mxu0 %v2918_v20  ;;  %v4166_v16 = vld [vmem:[%s5763_s6 + $0x28] sm:$0xff]  ;;  %v4755_v19 = vpack.c.bf16 %v4168_v18, %v4167_v41  ;;  %v4176_v18 = vld [vmem:[%s5766_s9 + $0x1] ss:$0 sm:$0xff] }
0x185e   :  { %4581 = vmatprep.subr.mxu0 %v4950_v36 }
0x185f   :  { %v2905_v25 = vmul.f32 1.442695, %v2902_v23 }
0x1860   :  { %v2994_v26 = vpop.permute.xlu1 %2993 }
0x1861   :  { %4898 = vpow2.f32 %v2905_v25  ;;  %4577 = vmatpush3.msra.mxu1 %v2994_v26 }
0x1862   :  { %4586 = vmatprep.subr.mxu1 %v4950_v36 }
0x1864   :  { %v3072_v38 = vpop.permute.xlu1 %3071 }
0x1867   :  { %v4897_v28 = vpop.eup %4896 }
0x1868   :  { %v2907_v29 = vsel %vm215_vm2, %v4897_v28, 0.0  ;;  %v3150_v45 = vpop.permute.xlu1 %3149 }
0x1869   :  { %2908 = vadd.xlane.f32.xlu0 %v2907_v29 }
0x186b   :  { %v4899_v31 = vpop.eup %4898 }
0x186c   :  { %v2910_v32 = vsel %vm215_vm2, %v4899_v31, 0.0  ;;  %v3148_v30 = vpop.permute.xlu1 %3147 }
0x186d   :  { %2911 = vadd.xlane.f32.xlu0 %v2910_v32 }
0x1883   :  { %3069 = vrot.lane.b32.xlu0 %v5434_v54, %s5816_s24 }
0x18f6   :  { %v2909_v34 = vpop.xlane.xlu0 %2908 }
0x18f7   :  { %4900 = vrcp.f32 %v2909_v34 }
0x18fa   :  { %v2912_v37 = vpop.xlane.xlu0 %2911 }
0x18fb   :  { %4902 = vrcp.f32 %v2912_v37 }
0x18fe   :  { %v3070_v27 = vpop.permute.xlu0 %3069 }
0x1901   :  { %v4901_v40 = vpop.eup %4900 }
0x1902   :  { %v2915_v42 = vmul.f32 %v4901_v40, %v4897_v28 }
0x1904   :  { %4574 = vmatmul.mubr.msk.f32.vlgmr.msra.gmra.mrb[24].mxu0 %vm215_vm2, %v2915_v42 }
0x1905   :  { %v4903_v43 = vpop.eup %4902  ;;  %4582 = vmatpush3.xpose.msk.msra.mxu0 %vm215_vm2, %v3072_v38  ;;  %4583 = vmatprep.mubr.msk.f32.mxu0 %vm4951_vm1, %v4950_v36 }
0x1906   :  { %v2916_v46 = vmul.f32 %v4903_v43, %v4899_v31  ;;  %4591 = vmatprep.subr.mxu0 %v4950_v36 }
0x1908   :  { %4579 = vmatmul.mubr.msk.f32.vlgmr.msra.gmra.mrb[38].mxu1 %vm215_vm2, %v2916_v46  ;;  %4584 = vmatmul.mubr.msk.f32.vlgmr.msra.gmra.mrb[26].mxu0 %vm215_vm2, %v3070_v27 }
0x1909   :  { %4587 = vmatpush3.xpose.msk.msra.mxu1 %vm215_vm2, %v3150_v45  ;;  %4588 = vmatprep.mubr.msk.f32.mxu1 %vm4951_vm1, %v4950_v36 }
0x190a   :  { %4596 = vmatprep.subr.mxu1 %v4950_v36  ;;  %4593 = vmatprep.mubr.msk.f32.mxu0 %vm4951_vm1, %v4950_v36 }
0x190c   :  { %4589 = vmatmul.mubr.msk.f32.vlgmr.msra.gmra.mrb[40].mxu1 %vm215_vm2, %v3148_v30 }
0x190d   :  { %4598 = vmatprep.mubr.msk.f32.mxu1 %vm4951_vm1, %v4950_v36 }
0x19d7   :  { %v2989_v50 = vpop.f32.mrb[24].mxu0 }
0x19d8   :  { %v4575_v53 = vpop.f32.mrb[25].mxu0 }
0x19db   :  { %v3065_v55 = vpop.f32.mrb[38].mxu1  ;;  %v3143_v56 = vpop.f32.mrb[26].mxu0 }
0x19dc   :  { %v3225_v57 = vmul.f32 0.35355338, %v3143_v56  ;;  %v4580_v59 = vpop.f32.mrb[39].mxu1  ;;  %v4585_v60 = vpop.f32.mrb[27].mxu0 }
0x19de   :  { %v3227_v61 = vsub.f32 %v3225_v57, %v5148_v52 }
0x19df   :  { %v3221_v62 = vpop.f32.mrb[40].mxu1 }
0x19e0   :  { %v3226_v63 = vmul.f32 0.35355338, %v3221_v62  ;;  %v4590_v0 = vpop.f32.mrb[41].mxu1  ;;  %v3229_v39 = vsel %vm215_vm2, %v3227_v61, -inf }
0x19e1   :  { %3230 = vmax.xlane.f32.xlu0 %v3229_v39 }
0x19e2   :  { %v3228_v35 = vsub.f32 %v3226_v63, %v5151_v58 }
0x19e4   :  { %v3232_v33 = vsel %vm215_vm2, %v3228_v35, -inf }
0x19e5   :  { %3233 = vmax.xlane.f32.xlu1 %v3232_v33  ;;  %v4178_v33 = vld [vmem:[%s5767_s10 + $0x28] sm:$0xff] }
0x19f6   :  { %3327 = vrot.lane.b32.xlu1 %v5432_v51, %s5817_s4 }
0x19fa   :  { %3405 = vrot.lane.b32.xlu1 %v5528_v4, %s5818_s30 }
0x19fe   :  { %3407 = vrot.lane.b32.xlu1 %v5530_v6, %s5818_s30 }
0x1a02   :  { %3415 = vrot.lane.b32.xlu1 %v3065_v55, %s5819_s0 }
0x1a6e   :  { %v3231_v52 = vpop.xlane.xlu0 %3230 }
0x1a6f   :  { %v3235_v1 = vsub.f32 %v3227_v61, %v3231_v52 }
0x1a71   :  { %v3237_v2 = vmul.f32 1.442695, %v3235_v1  ;;  %v4179_v1 = vld [vmem:[%s5767_s10 + $0x30] sm:$0xff] }
0x1a72   :  { %v3234_v3 = vpop.xlane.xlu1 %3233 }
0x1a73   :  { %4904 = vpow2.f32 %v3237_v2  ;;  %v3236_v58 = vsub.f32 %v3228_v35, %v3234_v3  ;;  %v4180_v2 = vld [vmem:[%s5767_s10 + $0x38] sm:$0xff] }
0x1a74   :  { %v4763_v3 = vpack.c.bf16 %v4180_v2, %v4179_v1 }
0x1a75   :  { %v3239_v5 = vmul.f32 1.442695, %v3236_v58  ;;  %v4185_v58 = vld [vmem:[%s5769_s12 + $0x80] sm:$0xff] }
0x1a76   :  { %v3328_v7 = vpop.permute.xlu1 %3327 }
0x1a77   :  { %4906 = vpow2.f32 %v3239_v5  ;;  %4597 = vmatpush3.msra.mxu1 %v3328_v7  ;;  %v4186_v5 = vld [vmem:[%s5769_s12 + $0x88] sm:$0xff]  ;;  %v4187_v7 = vld [vmem:[%s5769_s12 + $0x90] sm:$0xff] }
0x1a7a   :  { %v3406_v26 = vpop.permute.xlu1 %3405 }
0x1a7b   :  { %v3427_v31 = vsel %vm215_vm2, %v5488_v22, %v3406_v26  ;;  %v4170_v22 = vld [vmem:[%s5764_s7 + $0x1] ss:$0 sm:$0xff] }
0x1a7d   :  { %v4905_v8 = vpop.eup %4904 }
0x1a7e   :  { %v3241_v51 = vsel %vm215_vm2, %v4905_v8, 0.0  ;;  %v3408_v28 = vpop.permute.xlu1 %3407 }
0x1a7f   :  { %3242 = vadd.xlane.f32.xlu0 %v3241_v51  ;;  %v3428_v40 = vsel %vm215_vm2, %v5490_v24, %v3408_v28  ;;  %v4188_v51 = vld [vmem:[%s5769_s12 + $0x98] sm:$0xff]  ;;  %v4191_v28 = vld [vmem:[%s5769_s12 + $0xb0] sm:$0xff] }
0x1a81   :  { %v4907_v4 = vpop.eup %4906 }
0x1a82   :  { %v3244_v9 = vsel %vm215_vm2, %v4907_v4, 0.0  ;;  %v3416_v32 = vpop.permute.xlu1 %3415 }
0x1a83   :  { %3245 = vadd.xlane.f32.xlu0 %v3244_v9  ;;  %v3430_v42 = vsel %vm1585_vm3, %v3428_v40, %v3416_v32  ;;  %v4189_v9 = vld [vmem:[%s5769_s12 + $0xa0] sm:$0xff]  ;;  %v4196_v40 = vld [vmem:[%s5769_s12 + $0xd8] sm:$0xff] }
0x1a84   :  { %v4193_v32 = vld [vmem:[%s5769_s12 + $0xc0] sm:$0xff] }
0x1a99   :  { %3251 = vrot.lane.b32.xlu0 %v5434_v54, %s5817_s4  ;;  %v4165_v54 = vld [vmem:[%s5763_s6 + $0x20] sm:$0xff] }
0x1a9a   :  { %v4751_v17 = vpack.c.bf16 %v4166_v16, %v4165_v54 }
0x1a9d   :  { %3413 = vrot.lane.b32.xlu0 %v2989_v50, %s5819_s0 }
0x1b0c   :  { %v3243_v6 = vpop.xlane.xlu0 %3242 }
0x1b0d   :  { %4908 = vrcp.f32 %v3243_v6  ;;  %v4190_v6 = vld [vmem:[%s5769_s12 + $0xa8] sm:$0xff] }
0x1b10   :  { %v3246_v10 = vpop.xlane.xlu0 %3245 }
0x1b11   :  { %4910 = vrcp.f32 %v3246_v10  ;;  %v4775_v10 = vpack.c.bf16 %v4190_v6, %v4189_v9 }
0x1b14   :  { %v3252_v11 = vpop.permute.xlu0 %3251 }
0x1b15   :  { %4592 = vmatpush3.msra.mxu0 %v3252_v11 }
0x1b16   :  { %4752 = vmatprep.subr.bf16.mxu0 %v4751_v17 }
0x1b17   :  { %v4909_v12 = vpop.eup %4908 }
0x1b18   :  { %v3249_v13 = vmul.f32 %v4909_v12, %v4905_v8  ;;  %v3414_v29 = vpop.permute.xlu0 %3413  ;;  %v4767_v8 = vpack.c.bf16 %v4186_v5, %v4185_v58 }
0x1b19   :  { %v3429_v34 = vsel %vm1585_vm3, %v3427_v31, %v3414_v29  ;;  %v4192_v29 = vld [vmem:[%s5769_s12 + $0xb8] sm:$0xff] }
0x1b1a   :  { %4594 = vmatmul.mubr.msk.f32.vlgmr.msra.gmra.mrb[28].mxu0 %vm215_vm2, %v3249_v13  ;;  %v4779_v31 = vpack.c.bf16 %v4192_v29, %v4191_v28  ;;  %v4206_v28 = vld [vmem:[%s5772_s15 + $0x1] ss:$0 sm:$0xff] }
0x1b1b   :  { %v4911_v14 = vpop.eup %4910  ;;  %4754 = vmatpush3.bf16.msra.mxu0 %v4751_v17  ;;  %v4175_v17 = vld [vmem:[%s5765_s8 + $0x1] ss:$0 sm:$0xff] }
0x1b1c   :  { %v3250_v15 = vmul.f32 %v4911_v14, %v4907_v4  ;;  %4756 = vmatprep.subr.bf16.mxu0 %v4755_v19  ;;  %v4771_v4 = vpack.c.bf16 %v4188_v51, %v4187_v7 }
0x1b1e   :  { %4599 = vmatmul.mubr.msk.f32.vlgmr.msra.gmra.mrb[42].mxu1 %vm215_vm2, %v3250_v15 }
0x1b1f   :  { %4758 = vmatpush3.bf16.msra.mxu0 %v4755_v19 }
0x1b20   :  { %4768 = vmatprep.subr.bf16.mxu0 %v4767_v8 }
0x1bed   :  { %v3323_v20 = vpop.f32.mrb[28].mxu0 }
0x1bee   :  { %3421 = vrot.lane.b32.xlu0 %v3323_v20, %s5820_s27  ;;  %v4595_v21 = vpop.f32.mrb[29].mxu0 }
0x1bf1   :  { %v3399_v23 = vpop.f32.mrb[42].mxu1 }
0x1bf2   :  { %3423 = vrot.lane.b32.xlu1 %v3399_v23, %s5820_s27  ;;  %v4600_v25 = vpop.f32.mrb[43].mxu1 }
0x1c60   :  { %v3422_v37 = vpop.permute.xlu0 %3421 }
0x1c61   :  { %v3431_v38 = vsel %vm1588_vm4, %v3429_v34, %v3422_v37  ;;  %v4194_v34 = vld [vmem:[%s5769_s12 + $0xc8] sm:$0xff] }
0x1c62   :  { %4609 = vmatprep.mubr.msk.f32.mxu0 %vm76_vm0, %v3431_v38  ;;  %v4783_v37 = vpack.c.bf16 %v4194_v34, %v4193_v32  ;;  %v4195_v38 = vld [vmem:[%s5769_s12 + $0xd0] sm:$0xff]  ;;  %v3831_v32 = vmul.u32 8, %v5142_v47  ;;  %v3911_v47 = vld [vmem:[%s5773_s16 + $0x18] sm:$0xff] }
0x1c64   :  { %v3424_v43 = vpop.permute.xlu1 %3423 }
0x1c65   :  { %v3432_v45 = vsel %vm1588_vm4, %v3430_v42, %v3424_v43  ;;  %v4787_v42 = vpack.c.bf16 %v4196_v40, %v4195_v38  ;;  %v4197_v43 = vld [vmem:[%s5769_s12 + $0xe0] sm:$0xff] }
0x1c66   :  { %4610 = vmatmul.mubr.msk.f32.vlgmr.msra.gmra.mrb[30].mxu0 %vm76_vm0, %v3432_v45  ;;  %v4198_v45 = vld [vmem:[%s5769_s12 + $0xe8] sm:$0xff]  ;;  %v3908_v40 = vld [vmem:[%s5773_s16] sm:$0xff] }
0x1c67   :  { %4770 = vmatpush3.bf16.msra.mxu0 %v4767_v8 }
0x1c68   :  { %4772 = vmatprep.subr.bf16.mxu0 %v4771_v4 }
0x1c6b   :  { %4774 = vmatpush3.bf16.msra.mxu0 %v4771_v4 }
0x1c6c   :  { %4776 = vmatprep.subr.bf16.mxu0 %v4775_v10 }
0x1c6f   :  { %4778 = vmatpush3.bf16.msra.mxu0 %v4775_v10 }
0x1c70   :  { %4780 = vmatprep.subr.bf16.mxu0 %v4779_v31 }
0x1c73   :  { %4782 = vmatpush3.bf16.msra.mxu0 %v4779_v31  ;;  %v3830_v31 = vand.u32 127, %v371_v44  ;;  %v3910_v44 = vld [vmem:[%s5773_s16 + $0x10] sm:$0xff] }
0x1c74   :  { %4784 = vmatprep.subr.bf16.mxu0 %v4783_v37 }
0x1c75   :  { %vm3832_vm5 = vcmp.eq.s32.totalorder %v3830_v31, %v3831_v32 }
0x1c77   :  { %4786 = vmatpush3.bf16.msra.mxu0 %v4783_v37 }
0x1c78   :  { %4788 = vmatprep.subr.bf16.mxu0 %v4787_v42 }
0x1c7b   :  { %4790 = vmatpush3.bf16.msra.mxu0 %v4787_v42  ;;  %v3909_v42 = vld [vmem:[%s5773_s16 + $0x8] sm:$0xff] }
0x1d39   :  { %v4611_v46 = vpop.f32.mrb[30].mxu0 }
0x1d3a   :  { %v3524_v27 = vadd.f32 %v4611_v46, %v4170_v22  ;;  %v3518_v30 = vpop.f32.mrb[31].mxu0  ;;  %v4199_v46 = vld [vmem:[%s5769_s12 + $0xf0] sm:$0xff] }
0x1d3b   :  { %v3519_v50 = vadd.f32 %v4170_v22, %v3518_v30  ;;  %v4791_v22 = vpack.c.bf16 %v4198_v45, %v4197_v43  ;;  %v4207_v45 = vsel %vm3832_vm5, 1.0, %v4950_v36 }
0x1d3c   :  { %v3528_v53 = vadd.f32 %v3524_v27, %v5421_v49  ;;  %v4200_v27 = vld [vmem:[%s5769_s12 + $0xf8] sm:$0xff] }
0x1d3d   :  { %v3527_v55 = vadd.f32 %v3519_v50, %v5419_v48  ;;  %v4177_v48 = vld [vmem:[%s5767_s10 + $0x20] sm:$0xff]  ;;  %4792 = vmatprep.subr.bf16.mxu0 %v4791_v22  ;;  %v4795_v30 = vpack.c.bf16 %v4200_v27, %v4199_v46  ;;  %v4806_v46 = vpack.c.bf16 %v3911_v47, %v3910_v44 }
0x1d3e   :  { %v3536_v24 = vsel %vm76_vm0, %v3528_v53, 0.0  ;;  %v4759_v52 = vpack.c.bf16 %v4178_v33, %v4177_v48  ;;  %4794 = vmatpush3.bf16.msra.mxu0 %v4791_v22  ;;  %v4182_v50 = vld [vmem:[%s5768_s11 + $0x1] ss:$0 sm:$0xff]  ;;  %v4803_v22 = vpack.c.bf16 %v3909_v42, %v3908_v40 }
0x1d3f   :  { %3537 = vadd.xlane.f32.xlu1 %v3536_v24  ;;  %v3533_v56 = vsel %vm76_vm0, %v3527_v55, 0.0  ;;  %4796 = vmatprep.subr.bf16.mxu0 %v4795_v30  ;;  %v4202_v48 = vld [vmem:[%s5770_s13 + $0x1] ss:$0 sm:$0xff] }
0x1d40   :  { %3534 = vadd.xlane.f32.xlu0 %v3533_v56  ;;  %4760 = vmatprep.subr.bf16.mxu1 %v4759_v52 }
0x1d41   :  { %4762 = vmatpush3.bf16.msra.mxu1 %v4759_v52 }
0x1d42   :  { %4764 = vmatprep.subr.bf16.mxu1 %v4763_v3  ;;  %4798 = vmatpush3.bf16.msra.mxu0 %v4795_v30 }
0x1d45   :  { %4766 = vmatpush3.bf16.msra.mxu1 %v4763_v3 }
0x1dcc   :  { %v3538_v57 = vpop.xlane.xlu1 %3537 }
0x1dcd   :  { %v3540_v59 = vmul.f32 0.03125, %v3538_v57  ;;  %v3535_v60 = vpop.xlane.xlu0 %3534 }
0x1dce   :  { %v3539_v61 = vmul.f32 0.03125, %v3535_v60 }
0x1dcf   :  { %v3542_v62 = vsub.f32 %v3528_v53, %v3540_v59 }
0x1dd0   :  { %v3541_v63 = vsub.f32 %v3527_v55, %v3539_v61 }
0x1dd1   :  { %v3544_v35 = vmul.f32 %v3542_v62, %v3542_v62 }
0x1dd2   :  { %v3543_v0 = vmul.f32 %v3541_v63, %v3541_v63 }
0x1dd3   :  { %v3548_v49 = vsel %vm76_vm0, %v3544_v35, 0.0 }
0x1dd4   :  { %v3545_v39 = vsel %vm76_vm0, %v3543_v0, 0.0 }
0x1dd5   :  { %3546 = vadd.xlane.f32.xlu0 %v3545_v39 }
0x1dd9   :  { %3549 = vadd.xlane.f32.xlu0 %v3548_v49 }
0x1e62   :  { %v3547_v11 = vpop.xlane.xlu0 %3546 }
0x1e63   :  { %v3551_v12 = vmul.f32 0.03125, %v3547_v11 }
0x1e65   :  { %v3553_v13 = vadd.f32 1e-12, %v3551_v12 }
0x1e66   :  { %v3550_v14 = vpop.xlane.xlu0 %3549 }
0x1e67   :  { %4912 = vrsqrt.f32 %v3553_v13  ;;  %v3552_v15 = vmul.f32 0.03125, %v3550_v14 }
0x1e69   :  { %v3554_v54 = vadd.f32 1e-12, %v3552_v15  ;;  %v4966_v15 = vmov 0.0|0.0  }
0x1e6a   :  { %4799 = vmatprep.subr.bf16.mxu1 %v4966_v15 }
0x1e6b   :  { %4914 = vrsqrt.f32 %v3554_v54 }
0x1e71   :  { %v4913_v16 = vpop.eup %4912 }
0x1e72   :  { %v3557_v41 = vmul.f32 %v4913_v16, %v3541_v63 }
0x1e74   :  { %v3565_v19 = vmul.f32 %v4175_v17, %v3557_v41 }
0x1e75   :  { %v4915_v20 = vpop.eup %4914 }
0x1e76   :  { %v3558_v21 = vmul.f32 %v4915_v20, %v3542_v62  ;;  %v3573_v23 = vadd.f32 %v4176_v18, %v3565_v19 }
0x1e78   :  { %v3566_v25 = vmul.f32 %v4175_v17, %v3558_v21  ;;  %4620 = vmatprep.mubr.msk.f32.mxu1 %vm76_vm0, %v3573_v23  ;;  %v4205_v21 = vld [vmem:[%s5771_s14 + $0x1] ss:$0 sm:$0xff] }
0x1e7a   :  { %v3574_v26 = vadd.f32 %v4176_v18, %v3566_v25 }
0x1e7c   :  { %4621 = vmatmul.mubr.msk.f32.vlgmr.msra.gmra.mrb[44].mxu1 %vm76_vm0, %v3574_v26 }
0x1e7d   :  { %4662 = vmatprep.mubr.msk.f32.mxu1 %vm4951_vm1, %v4950_v36 }
0x1f4f   :  { %v4622_v53 = vpop.f32.mrb[44].mxu1 }
0x1f50   :  { %v3666_v55 = vadd.f32 %v4622_v53, %v4182_v50  ;;  %v3660_v24 = vpop.f32.mrb[45].mxu1  ;;  %v3994_v53 = vld [vmem:[%s5775_s18 + $0x8] sm:$0xff] }
0x1f51   :  { %v3661_v56 = vadd.f32 %v4182_v50, %v3660_v24  ;;  %v3993_v50 = vld [vmem:[%s5775_s18] sm:$0xff] }
0x1f52   :  { %v3672_v57 = vmul.f32 0.70710677, %v3666_v55  ;;  %v3670_v39 = vmul.f32 0.5, %v3666_v55  ;;  %v3995_v55 = vld [vmem:[%s5775_s18 + $0x10] sm:$0xff]  ;;  %v4809_v24 = vpack.c.bf16 %v3994_v53, %v3993_v50 }
0x1f53   :  { %v3671_v59 = vmul.f32 0.70710677, %v3661_v56  ;;  %v3669_v63 = vmul.f32 0.5, %v3661_v56  ;;  %v3996_v56 = vld [vmem:[%s5775_s18 + $0x18] sm:$0xff]  ;;  %s4967_s18 = smov [#allocation2]  }
0x1f54   :  { %4916 = verf.f32 %v3672_v57  ;;  %v4812_v57 = vpack.c.bf16 %v3996_v56, %v3995_v55  ;;  %s4085_s30 = sshll.u32 %s4967_s18, 4  ;;  %s4086_s30 = int_to_ptr.vmem [resolvable:$true] %s4085_s30 }
0x1f55   :  { %4918 = verf.f32 %v3671_v59  ;;  %p4931_p1 = scmp.lt.s32.totalorder %s4086_s30, %s4086_s30 }
0x1f5e   :  { %v4917_v60 = vpop.eup %4916 }
0x1f5f   :  { %v4919_v61 = vpop.eup %4918  ;;  %v3676_v62 = vadd.f32 1.0, %v4917_v60 }
0x1f60   :  { %v3675_v0 = vadd.f32 1.0, %v4919_v61 }
0x1f61   :  { %v3678_v49 = vmul.f32 %v3676_v62, %v3670_v39 }
0x1f62   :  { %v3677_v35 = vmul.f32 %v3675_v0, %v3669_v63  ;;  %v4211_v63 = vld [vmem:[%s5776_s19] ss:$0 sm:$0xff] }
0x1f64   :  { %4655 = vmatprep.mubr.f32.mxu0 %v3677_v35 }
0x1f65   :  { %4656 = vmatmul.mubr.f32.vlgmr.msra.gmra.mrb[32].mxu0 %v3678_v49 }
0x2038   :  { %v4657_v33 = vpop.f32.mrb[32].mxu0 }
0x2039   :  { %v3776_v52 = vadd.f32 %v4657_v33, %v4202_v48  ;;  %v3770_v1 = vpop.f32.mrb[33].mxu0 }
0x203a   :  { %v3771_v2 = vadd.f32 %v4202_v48, %v3770_v1 }
0x203b   :  { %v3780_v3 = vadd.f32 %v3776_v52, %v3574_v26 }
0x203c   :  { %v3779_v58 = vadd.f32 %v3771_v2, %v3573_v23 }
0x203d   :  { %v3788_v5 = vsel %vm76_vm0, %v3780_v3, 0.0 }
0x203e   :  { %3789 = vadd.xlane.f32.xlu1 %v3788_v5  ;;  %v3785_v7 = vsel %vm76_vm0, %v3779_v58, 0.0 }
0x203f   :  { %3786 = vadd.xlane.f32.xlu0 %v3785_v7 }
0x20cb   :  { %v3790_v8 = vpop.xlane.xlu1 %3789 }
0x20cc   :  { %v3792_v51 = vmul.f32 0.03125, %v3790_v8  ;;  %v3787_v4 = vpop.xlane.xlu0 %3786 }
0x20cd   :  { %v3791_v9 = vmul.f32 0.03125, %v3787_v4 }
0x20ce   :  { %v3794_v6 = vsub.f32 %v3780_v3, %v3792_v51 }
0x20cf   :  { %v3793_v10 = vsub.f32 %v3779_v58, %v3791_v9 }
0x20d0   :  { %v3796_v11 = vmul.f32 %v3794_v6, %v3794_v6 }
0x20d1   :  { %v3795_v12 = vmul.f32 %v3793_v10, %v3793_v10 }
0x20d2   :  { %v3800_v13 = vsel %vm76_vm0, %v3796_v11, 0.0 }
0x20d3   :  { %3801 = vadd.xlane.f32.xlu1 %v3800_v13  ;;  %v3797_v14 = vsel %vm76_vm0, %v3795_v12, 0.0 }
0x20d4   :  { %3798 = vadd.xlane.f32.xlu0 %v3797_v14 }
0x2160   :  { %v3802_v54 = vpop.xlane.xlu1 %3801 }
0x2161   :  { %v3804_v16 = vmul.f32 0.03125, %v3802_v54  ;;  %v3799_v17 = vpop.xlane.xlu0 %3798 }
0x2162   :  { %v3803_v41 = vmul.f32 0.03125, %v3799_v17 }
0x2163   :  { %v3806_v18 = vadd.f32 1e-12, %v3804_v16 }
0x2164   :  { %v3805_v19 = vadd.f32 1e-12, %v3803_v41 }
0x2165   :  { %4920 = vrsqrt.f32 %v3806_v18 }
0x2166   :  { %4922 = vrsqrt.f32 %v3805_v19 }
0x216f   :  { %v4921_v20 = vpop.eup %4920 }
0x2170   :  { %v4923_v23 = vpop.eup %4922  ;;  %v3810_v25 = vmul.f32 %v4921_v20, %v3794_v6 }
0x2171   :  { %v3809_v26 = vmul.f32 %v4923_v23, %v3793_v10 }
0x2172   :  { %v3818_v29 = vmul.f32 %v4205_v21, %v3810_v25 }
0x2173   :  { %v3817_v34 = vmul.f32 %v4205_v21, %v3809_v26 }
0x2174   :  { %v3826_v37 = vadd.f32 %v4206_v28, %v3818_v29 }
0x2175   :  { %v3825_v38 = vadd.f32 %v4206_v28, %v3817_v34 }
0x2177   :  { %v4800_v43 = vpack.c.bf16 %v3826_v37, %v3825_v38 }
0x2179   :  { %4801 = vmatpush3.bf16.msra.mxu1 %v4800_v43 }
0x217a   :  { %4802 = vmatprep.subr.bf16.mxu1 %v4966_v15 }
0x217c   :  { %4663 = vmatmul.mubr.msk.f32.vlgmr.msra.gmra.mrb[46].mxu1 %vm1585_vm3, %v4207_v45 }
0x217d   :  { %4804 = vmatpush3.bf16.msra.mxu1 %v4803_v22  ;;  %4673 = vmatprep.mubr.msk.f32.mxu1 %vm4951_vm1, %v4950_v36 }
0x217e   :  { %4805 = vmatprep.subr.bf16.mxu1 %v4966_v15 }
0x2181   :  { %4807 = vmatpush3.bf16.msra.mxu1 %v4806_v46 }
0x2182   :  { %4808 = vmatprep.subr.bf16.mxu1 %v4966_v15 }
0x224f   :  { %v3904_v27 = vpop.f32.mrb[46].mxu1 }
0x2250   :  { %v4664_v30 = vpop.f32.mrb[47].mxu1  ;;  %4674 = vmatmul.mubr.msk.f32.vlgmr.msra.gmra.mrb[48].mxu1 %vm76_vm0, %v3904_v27 }
0x2251   :  { %4684 = vmatprep.mubr.msk.f32.mxu1 %vm4951_vm1, %v4950_v36  ;;  %4810 = vmatpush3.bf16.msra.mxu1 %v4809_v24  ;;  %v4209_v36 = vld [vmem:[%s5774_s17] ss:$0 sm:$0xff]  ;;  %s4926_s17 = scalar_lea.vmem %s4086_s30, 32 }
0x2252   :  { %4811 = vmatprep.subr.bf16.mxu1 %v4966_v15  ;;  %p4927_p0 = scmp.ne.s32.totalorder %s4086_s30, %s4926_s17  ;;  %p4932_p2 = scmp.lt.s32.totalorder %s4926_s17, %s4926_s17 }
0x2254   :  { %p4933_p3 = por %p4932_p2, %p4931_p1 }
0x2255   :  { %4813 = vmatpush3.bf16.msra.mxu1 %v4812_v57 }
0x2256   :  { %p4934_p4 = pnand %p4933_p3, %p4927_p0 }
0x2323   :  { %v3988_v59 = vpop.f32.mrb[48].mxu1 }
0x2324   :  { %v3989_v60 = vadd.f32 %v4209_v36, %v3988_v59  ;;  %v4675_v61 = vpop.f32.mrb[49].mxu1 }
0x2326   :  { %4924 = vtanh.f32 %v3989_v60 }
0x2330   :  { %v4925_v62 = vpop.eup %4924 }
0x2331   :  { %4685 = vmatmul.mubr.msk.f32.vlgmr.msra.gmra.mrb[50].mxu1 %vm76_vm0, %v4925_v62 }
0x2404   :  { %v4073_v0 = vpop.f32.mrb[50].mxu1 }
0x2405   :  { %v4074_v39 = vadd.f32 %v4211_v63, %v4073_v0  ;;  %v4686_v35 = vpop.f32.mrb[51].mxu1 }
0x2407   :  { %4078 = vst.msk [vmem:[#allocation2] sm:$0x3] %vm4077_vm6, %v4074_v39 }
0x2408   :  { %4937 = shalt.err (!%p4934_p4)
}
0x2409   :  { %s4938_s13 = scalar_lea.hbm %s5777_s20, 32 }
0x240a   :  { %p4939_p5 = scmp.ne.s32.totalorder %s5777_s20, %s4938_s13  ;;  %p4942_p6 = scmp.lt.u32.totalorder %s4938_s13, %s5777_s20 }
0x240c   :  { %p4944_p7 = pnand %p4942_p6, %p4939_p5 }
0x240e   :  { %4947 = shalt.err (!%p4944_p7)
}
0x240f   :  { %4088 = dma.vmem_to_hbm [thread:$0]  %s4086_s30, 32, %s5777_s20, [#allocation3]  }
0x2410   :  { %4948 = dma.done.wait [#allocation3], 32  }
0x2411   :  { %4949 = vsyncadd [#allocation3], 4294967264 }
0x2412   :  { %4092 = vsyncpa [#allocation3], 1 }

</bundles_post_ra>
